<compile_context>
chip_gen: v7x
topology: tpu7x:2x2x1
jax: 0.10.0
libtpu: 0.0.40
codegen_flags: <defaults>
</compile_context>

<pallas_src>
import functools

import jax
import jax.numpy as jnp
from jax.experimental import pallas as pl
from jax.experimental.pallas import tpu as pltpu


def _round_up(n, m):
    return ((n + m - 1) // m) * m


def _kvlora_kernel(x_ref,                 # (tm, I) token tile
                   w_ref,                 # (I, O_total)  = module.weight.T
                   b_ref,                 # (1, O_total)  = module.bias
                   a0_ref, bs0_ref,       # (I, R), (R, OF)  K-branch LoRA (scale folded)
                   a1_ref, bs1_ref,       # (I, R), (R, OF)  V-branch LoRA (scale folded)
                   o_ref,                 # (tm, O_total) output tile
                   *, o_q, of):
    x = x_ref[...].astype(jnp.float32)
    w = w_ref[...].astype(jnp.float32)                         # (I, O_total)

    # LoRA weight deltas for the K / V output column slices.
    # (s*(B@A)).T == A.T @ (s*B).T ; tiny matmuls, recomputed per tile
    # (hidden under the main MXU matmul, keeps the grid fully parallel).
    d_k = jnp.dot(a0_ref[...], bs0_ref[...], preferred_element_type=jnp.float32)
    d_v = jnp.dot(a1_ref[...], bs1_ref[...], preferred_element_type=jnp.float32)

    w_k = w[:, o_q:o_q + of] + d_k
    w_v = w[:, o_q + of:] + d_v
    if o_q > 0:   # untouched (Q) output columns keep the original weights
        w_eff = jnp.concatenate([w[:, :o_q], w_k, w_v], axis=1)
    else:
        w_eff = jnp.concatenate([w_k, w_v], axis=1)

    out = jnp.dot(x, w_eff, preferred_element_type=jnp.float32)
    out = out + b_ref[...].astype(jnp.float32)
    o_ref[...] = out.astype(o_ref.dtype)


@functools.partial(jax.jit, static_argnames=("tm",))
def kvlora_forward(x, weight, bias, lora_a0, lora_b0, lora_a1, lora_b1,
                   scale0, scale1, *, tm=1024):
    """KVLoRA.forward(module, x) with module = Linear(weight, bias).

    x:        (B, S, I)
    weight:   (O_total, I)   torch nn.Linear layout
    bias:     (O_total,)
    lora_a*:  (rank, I)
    lora_b*:  (OF, rank)
    scale*:   scalar (the Scaler parameter)
    """
    B, S, I = x.shape
    O_total = weight.shape[0]
    OF = lora_b0.shape[0]
    rank = lora_a0.shape[0]
    o_q = O_total - 2 * OF
    assert o_q >= 0

    T = B * S
    x2 = x.reshape(T, I)

    # --- token tiling: big tiles for the HBM roofline, cdiv + zero-pad the
    # remainder, and cap the tile so the (parallel) grid keeps >= 2 steps.
    tm = _round_up(tm, 16)
    tm_eff = min(tm, max(16, _round_up(pl.cdiv(T, 2), 16)))
    grid = pl.cdiv(T, tm_eff)
    T_pad = grid * tm_eff
    if T_pad != T:
        x2 = jnp.pad(x2, ((0, T_pad - T), (0, 0)))

    # --- weight-side layout plumbing (tiny, one-off per call):
    #   transpose to (in, out), zero-pad rank to a multiple of 8 (sublane
    #   alignment), and fold the learnable scale into lora_B.
    R = _round_up(max(rank, 1), 8)
    w_t = weight.T                                            # (I, O_total)
    b2 = bias.reshape(1, O_total)
    a0_t = jnp.pad(lora_a0.T, ((0, 0), (0, R - rank)))        # (I, R)
    a1_t = jnp.pad(lora_a1.T, ((0, 0), (0, R - rank)))
    bs0 = jnp.pad((scale0 * lora_b0).T, ((0, R - rank), (0, 0)))   # (R, OF)
    bs1 = jnp.pad((scale1 * lora_b1).T, ((0, R - rank), (0, 0)))

    tok_spec = pl.BlockSpec((tm_eff, I), lambda i: (i, 0))
    out_spec = pl.BlockSpec((tm_eff, O_total), lambda i: (i, 0))
    full = lambda shape: pl.BlockSpec(shape, lambda i: (0, 0))

    io_bytes = x.dtype.itemsize
    cost = pl.CostEstimate(
        flops=2 * T_pad * I * O_total + grid * 4 * I * R * OF,
        transcendentals=0,
        bytes_accessed=(T_pad * I + T_pad * O_total) * io_bytes
        + (I * O_total + O_total + 2 * I * R + 2 * R * OF) * 4,
    )

    out = pl.pallas_call(
        functools.partial(_kvlora_kernel, o_q=o_q, of=OF),
        out_shape=jax.ShapeDtypeStruct((T_pad, O_total), x.dtype),
        grid_spec=pltpu.PrefetchScalarGridSpec(
            num_scalar_prefetch=0,
            grid=(grid,),
            in_specs=[
                tok_spec,                  # x tile
                full((I, O_total)),        # W^T
                full((1, O_total)),        # bias
                full((I, R)),              # A0^T
                full((R, OF)),             # (s0*B0)^T
                full((I, R)),              # A1^T
                full((R, OF)),             # (s1*B1)^T
            ],
            out_specs=out_spec,
        ),
        compiler_params=pltpu.CompilerParams(
            dimension_semantics=("parallel",)),
        cost_estimate=cost,
    )(x2, w_t, b2, a0_t, bs0, a1_t, bs1)

    return out[:T].reshape(B, S, O_total)


def kvlora_reference(x, weight, bias, lora_a, lora_b, scales):
    """Pure-JAX mirror of the PyTorch KVLoRA.forward."""
    deltas = [s * (Bm @ Am) for s, Am, Bm in zip(scales, lora_a, lora_b)]
    delta = jnp.concatenate(deltas, axis=0)                           # (2*OF, I)
    zeros = jnp.zeros((weight.shape[0] - delta.shape[0], weight.shape[1]),
                      weight.dtype)
    w_eff = weight + jnp.concatenate([zeros, delta], axis=0)          # (O_total, I)
    return x @ w_eff.T + bias


if __name__ == "__main__":
    # Fused QKV linear: LoRA only touches the last 2*out_features (K, V) rows.
    in_features = 128
    out_features = 128
    o_total = 3 * out_features
    rank = 5
    B, S = 2, 512            # 1024 tokens -> 2 parallel grid steps of tm=512

    key = jax.random.PRNGKey(0)
    kx, kw, kb, ka0, ka1, kb0, kb1 = jax.random.split(key, 7)

    x = jax.random.normal(kx, (B, S, in_features), jnp.float32)

    bound = 1.0 / (in_features ** 0.5)
    weight = jax.random.uniform(kw, (o_total, in_features), jnp.float32,
                                -bound, bound)
    bias = jax.random.uniform(kb, (o_total,), jnp.float32, -bound, bound)

    # lora_A ~ kaiming_uniform(a=sqrt(5))  -> bound = 1/sqrt(fan_in).
    # lora_B is zero-initialized in the module; use small random values here
    # so the LoRA path is actually exercised by the test.
    a_bound = 1.0 / (in_features ** 0.5)
    lora_a0 = jax.random.uniform(ka0, (rank, in_features), jnp.float32,
                                 -a_bound, a_bound)
    lora_a1 = jax.random.uniform(ka1, (rank, in_features), jnp.float32,
                                 -a_bound, a_bound)
    lora_b0 = jax.random.normal(kb0, (out_features, rank), jnp.float32) * 0.02
    lora_b1 = jax.random.normal(kb1, (out_features, rank), jnp.float32) * 0.02
    scale0 = jnp.array(0.5, jnp.float32)
    scale1 = jnp.array(1.5, jnp.float32)

    out = kvlora_forward(x, weight, bias, lora_a0, lora_b0, lora_a1, lora_b1,
                         scale0, scale1)
    out = jax.block_until_ready(out)

    ref = kvlora_reference(x, weight, bias, (lora_a0, lora_a1),
                           (lora_b0, lora_b1), (scale0, scale1))
    assert out.shape == (B, S, o_total)
    assert jnp.allclose(out, ref, atol=1e-4, rtol=1e-4)

    # bf16 IO path (halves HBM token traffic; compute stays f32 in-kernel).
    out_bf16 = kvlora_forward(x.astype(jnp.bfloat16), weight, bias,
                              lora_a0, lora_b0, lora_a1, lora_b1,
                              scale0, scale1)
    out_bf16 = jax.block_until_ready(out_bf16)
    assert jnp.allclose(out_bf16.astype(jnp.float32), ref, atol=1e-1, rtol=1e-1)

    print("KERNEL_OK")
</pallas_src>

<mosaic_0001>
module attributes {stable_mosaic.version = 11 : i64} {
  func.func @_kvlora_kernel(%arg0: i32, %arg1: memref<512x128xf32, #tpu.memory_space<vmem>>, %arg2: memref<128x384xf32, #tpu.memory_space<vmem>>, %arg3: memref<1x384xf32, #tpu.memory_space<vmem>>, %arg4: memref<128x8xf32, #tpu.memory_space<vmem>>, %arg5: memref<8x128xf32, #tpu.memory_space<vmem>>, %arg6: memref<128x8xf32, #tpu.memory_space<vmem>>, %arg7: memref<8x128xf32, #tpu.memory_space<vmem>>, %arg8: memref<512x384xf32, #tpu.memory_space<vmem>>) attributes {dimension_semantics = [#tpu.dimension_semantics<parallel>], iteration_bounds = array<i64: 2>, scalar_prefetch = 0 : i64, scratch_operands = 0 : i64, tpu.core_type = #tpu.core_type<tc>, window_params = [{transform_indices = @transform_0, window_bounds = array<i64: 512, 128>}, {pipeline_mode = #tpu.pipeline_mode<synchronous>, transform_indices = @transform_1, window_bounds = array<i64: 128, 384>}, {pipeline_mode = #tpu.pipeline_mode<synchronous>, transform_indices = @transform_2, window_bounds = array<i64: 1, 384>}, {pipeline_mode = #tpu.pipeline_mode<synchronous>, transform_indices = @transform_3, window_bounds = array<i64: 128, 8>}, {pipeline_mode = #tpu.pipeline_mode<synchronous>, transform_indices = @transform_4, window_bounds = array<i64: 8, 128>}, {pipeline_mode = #tpu.pipeline_mode<synchronous>, transform_indices = @transform_5, window_bounds = array<i64: 128, 8>}, {pipeline_mode = #tpu.pipeline_mode<synchronous>, transform_indices = @transform_6, window_bounds = array<i64: 8, 128>}, {transform_indices = @transform_7, window_bounds = array<i64: 512, 384>}]} {
    %c0 = arith.constant 0 : index
    %c0_0 = arith.constant 0 : index
    %0 = vector.load %arg1[%c0, %c0_0] : memref<512x128xf32, #tpu.memory_space<vmem>>, vector<512x128xf32>
    %c0_1 = arith.constant 0 : index
    %c0_2 = arith.constant 0 : index
    %1 = vector.load %arg2[%c0_1, %c0_2] : memref<128x384xf32, #tpu.memory_space<vmem>>, vector<128x384xf32>
    %c0_3 = arith.constant 0 : index
    %c0_4 = arith.constant 0 : index
    %2 = vector.load %arg4[%c0_3, %c0_4] : memref<128x8xf32, #tpu.memory_space<vmem>>, vector<128x8xf32>
    %c0_5 = arith.constant 0 : index
    %c0_6 = arith.constant 0 : index
    %3 = vector.load %arg5[%c0_5, %c0_6] : memref<8x128xf32, #tpu.memory_space<vmem>>, vector<8x128xf32>
    %cst = arith.constant dense<0.000000e+00> : vector<128x128xf32>
    %4 = tpu.matmul %2, %3, %cst {dimension_numbers = #tpu.dot_dimension_numbers<[1], [0], [0], [1], [0, 0, 1, 1], [], []>} : vector<128x8xf32>, vector<8x128xf32>, vector<128x128xf32> -> vector<128x128xf32>
    %c0_7 = arith.constant 0 : index
    %c0_8 = arith.constant 0 : index
    %5 = vector.load %arg6[%c0_7, %c0_8] : memref<128x8xf32, #tpu.memory_space<vmem>>, vector<128x8xf32>
    %c0_9 = arith.constant 0 : index
    %c0_10 = arith.constant 0 : index
    %6 = vector.load %arg7[%c0_9, %c0_10] : memref<8x128xf32, #tpu.memory_space<vmem>>, vector<8x128xf32>
    %cst_11 = arith.constant dense<0.000000e+00> : vector<128x128xf32>
    %7 = tpu.matmul %5, %6, %cst_11 {dimension_numbers = #tpu.dot_dimension_numbers<[1], [0], [0], [1], [0, 0, 1, 1], [], []>} : vector<128x8xf32>, vector<8x128xf32>, vector<128x128xf32> -> vector<128x128xf32>
    %8 = vector.extract_strided_slice %1 {offsets = [0, 128], sizes = [128, 128], strides = [1, 1]} : vector<128x384xf32> to vector<128x128xf32>
    %9 = arith.addf %8, %4 : vector<128x128xf32>
    %10 = vector.extract_strided_slice %1 {offsets = [0, 256], sizes = [128, 128], strides = [1, 1]} : vector<128x384xf32> to vector<128x128xf32>
    %11 = arith.addf %10, %7 : vector<128x128xf32>
    %12 = vector.extract_strided_slice %1 {offsets = [0, 0], sizes = [128, 128], strides = [1, 1]} : vector<128x384xf32> to vector<128x128xf32>
    %13 = tpu.concatenate %12, %9, %11 in 1 : vector<128x128xf32>, vector<128x128xf32>, vector<128x128xf32> -> vector<128x384xf32>
    %cst_12 = arith.constant dense<0.000000e+00> : vector<512x384xf32>
    %14 = tpu.matmul %0, %13, %cst_12 {dimension_numbers = #tpu.dot_dimension_numbers<[1], [0], [0], [1], [0, 0, 1, 1], [], []>} : vector<512x128xf32>, vector<128x384xf32>, vector<512x384xf32> -> vector<512x384xf32>
    %c0_13 = arith.constant 0 : index
    %c0_14 = arith.constant 0 : index
    %15 = vector.load %arg3[%c0_13, %c0_14] : memref<1x384xf32, #tpu.memory_space<vmem>>, vector<1x384xf32>
    %16 = vector.broadcast %15 : vector<1x384xf32> to vector<512x384xf32>
    %17 = arith.addf %14, %16 : vector<512x384xf32>
    %c0_15 = arith.constant 0 : index
    %c0_16 = arith.constant 0 : index
    %18 = vector.load %arg8[%c0_15, %c0_16] : memref<512x384xf32, #tpu.memory_space<vmem>>, vector<512x384xf32>
    tpu.vector_store %arg8[%c0_15, %c0_16], %17 {strides = array<i32>} : memref<512x384xf32, #tpu.memory_space<vmem>>, vector<512x384xf32>,
    return
  }
  func.func @transform_0(%arg0: i32) -> (i32, i32) {
    %c0_i32 = arith.constant 0 : i32
    %c0_i32_0 = arith.constant 0 : i32
    return %arg0, %c0_i32 : i32, i32
  }
  func.func @transform_1(%arg0: i32) -> (i32, i32) {
    %c0_i32 = arith.constant 0 : i32
    %c0_i32_0 = arith.constant 0 : i32
    %c0_i32_1 = arith.constant 0 : i32
    return %c0_i32, %c0_i32_0 : i32, i32
  }
  func.func @transform_2(%arg0: i32) -> (i32, i32) {
    %c0_i32 = arith.constant 0 : i32
    %c0_i32_0 = arith.constant 0 : i32
    %c0_i32_1 = arith.constant 0 : i32
    return %c0_i32, %c0_i32_0 : i32, i32
  }
  func.func @transform_3(%arg0: i32) -> (i32, i32) {
    %c0_i32 = arith.constant 0 : i32
    %c0_i32_0 = arith.constant 0 : i32
    %c0_i32_1 = arith.constant 0 : i32
    return %c0_i32, %c0_i32_0 : i32, i32
  }
  func.func @transform_4(%arg0: i32) -> (i32, i32) {
    %c0_i32 = arith.constant 0 : i32
    %c0_i32_0 = arith.constant 0 : i32
    %c0_i32_1 = arith.constant 0 : i32
    return %c0_i32, %c0_i32_0 : i32, i32
  }
  func.func @transform_5(%arg0: i32) -> (i32, i32) {
    %c0_i32 = arith.constant 0 : i32
    %c0_i32_0 = arith.constant 0 : i32
    %c0_i32_1 = arith.constant 0 : i32
    return %c0_i32, %c0_i32_0 : i32, i32
  }
  func.func @transform_6(%arg0: i32) -> (i32, i32) {
    %c0_i32 = arith.constant 0 : i32
    %c0_i32_0 = arith.constant 0 : i32
    %c0_i32_1 = arith.constant 0 : i32
    return %c0_i32, %c0_i32_0 : i32, i32
  }
  func.func @transform_7(%arg0: i32) -> (i32, i32) {
    %c0_i32 = arith.constant 0 : i32
    %c0_i32_0 = arith.constant 0 : i32
    return %arg0, %c0_i32 : i32, i32
  }
}

</mosaic_0001>

<bundles_post_ra>
// kernel: kvlora_forward.1
= control target key start
LH: loop header
LB: loop body
LE: loop exit
PB: predicated region body
PF: predicated region fallthrough
CT: control target
= control target key end

     0   :  { %12 = vsyncpa [#allocation3], 0  ;;  %s3712_s0 = inlined_call_operand.hbm [shape: f32[1024,128], index: 0, kind: input, shape index: {}]   ;;  %s3713_s1 = inlined_call_operand.vmem [shape: f32[128,384], index: 1, kind: input, shape index: {}]   ;;  %s3714_s2 = inlined_call_operand.vmem [shape: f32[1,384], index: 2, kind: input, shape index: {}]   ;;  %s3715_s3 = inlined_call_operand.vmem [shape: f32[128,8], index: 3, kind: input, shape index: {}]   ;;  %s3716_s4 = inlined_call_operand.vmem [shape: f32[8,128], index: 4, kind: input, shape index: {}]   ;;  %s3717_s5 = inlined_call_operand.vmem [shape: f32[128,8], index: 5, kind: input, shape index: {}]   ;;  %s3718_s6 = inlined_call_operand.vmem [shape: f32[8,128], index: 6, kind: input, shape index: {}]   ;;  %s3719_s7 = inlined_call_operand.hbm [shape: f32[1024,384], index: 7, kind: output, shape index: {}]  }
   0x1   :  { %14 = vsyncpa [#allocation3 + $0x1], 0 }
   0x2   :  { %15 = vsyncpa [#allocation4], 0 }
   0x3   :  { %17 = vsyncpa [#allocation4 + $0x1], 0  ;;  %s2613_s24 = smov 0   ;;  %s2615_s25 = smov 0  }
   0x4   :  { %s2617_s26 = smov 0   ;;  %s2619_s27 = smov 0  }
   0x5 LB: > { %s2634_s28 = sadd.s32 4294967295, %s2564_s27   ;;  %s1995_s29 = sadd.s32 4294967294, %s2564_s27   ;;  %s2564_s27 = sphi %s2619_s27, %s3732_s27   ;;  %s2560_s26 = sphi %s2617_s26, %s3731_s26   ;;  %s2556_s25 = sphi %s2615_s25, %s3730_s25   ;;  %s2552_s24 = sphi %s2613_s24, %s3729_s24  }
   0x6   : > { %s2638_s30 = sadd.s32 1, %s2564_s27   ;;  %s30_s8 = sadd.s32 1, %s2560_s26 }
   0x7   : > { %s27_s9 = ssub.s32 %s2564_s27, %s2638_s30  ;;  %p37_p0 = scmp.ne.s32.totalorder %s2560_s26, %s2556_s25 }
   0x8   : > { %p28_p1 = scmp.eq.s32.totalorder %s27_s9, 0  ;;  %p38_p2 = scmp.eq.s32.totalorder %s2564_s27, 0 }
   0x9   : > { %p43_p3 = scmp.ne.s32.totalorder %s2556_s25, %s2552_s24  ;;  %p44_p4 = scmp.eq.s32.totalorder %s2634_s28, 0 }
   0xa   : > { %s2650_s10 = scalar_select %p28_p1, %s2560_s26, %s30_s8  }
   0xb   : > { %p2652_p5 = por %p38_p2, %p37_p0  ;;  %p2656_p6 = por %p44_p4, %p43_p3 }
   0xc   : > { %p193_p7 = scmp.eq.s32.totalorder %s2634_s28, 1  ;;  %p199_p8 = scmp.eq.s32.totalorder %s1995_s29, 1 }
   0xd   : > { %p2429_p10 = scmp.lt.s32.totalorder %s2564_s27, 2  ;;  %s237_s15 = sand.u32 1, %s2560_s26  }
   0xe   : > { %p2663_p11 = por %p193_p7, %p37_p0  ;;  %p2667_p12 = por %p199_p8, %p43_p3 }
   0xf   : > { %s2040_s16 = sshll.u32 %s2564_s27, 13  ;;  %s1998_s17 = sshll.u32 %s237_s15, 9 }
  0x10   : > { %s3723_s13 = scalar_select %p2663_p11, 1, 0 }
  0x11   : > { %s3724_s14 = scalar_select %p2667_p12, 1, 0 }
  0x12   : > { %s2676_s20 = scalar_lea.hbm %s3712_s0, %s2040_s16  ;;  %s241_s21 = scalar_lea.vmem [#allocation2], %s1998_s17 }
  0x13   : > { %s248_s22 = sshll.u32 %s241_s21, 4  ;;  %p2680_p13 = pnand %p2429_p10, %p2652_p5  ;;  %s2684_s22 = int_to_ptr.vmem [resolvable:$true] %s248_s22 }
  0x14   : > { %s2686_s29 = scalar_lea.sflag [#allocation3], %s237_s15  ;;  %s2468_s8 = scalar_lea.hbm %s2676_s20, 8192 }
  0x15   : > { %p2469_p0 = scmp.ne.s32.totalorder %s2676_s20, %s2468_s8  ;;  %p2470_p1 = pneg %p2680_p13 }
  0x16   : > { %s2473_s16 = scalar_lea.hbm %s3712_s0, 16384  ;;  %p2474_p4 = scmp.lt.u32.totalorder %s2676_s20, %s3712_s0 }
  0x17   : > { %p2471_p2 = pnand %p2470_p1, %p2469_p0  ;;  %p2475_p5 = scmp.lt.u32.totalorder %s2473_s16, %s2468_s8 }
  0x18   : > { %p2477_p8 = scmp.lt.u32.totalorder %s2468_s8, %s2676_s20 }
  0x19   : > { %p2472_p3 = pneg %p2471_p2  ;;  %p2476_p7 = por %p2475_p5, %p2474_p4 }
  0x1b   : > { %p2478_p10 = por %p2477_p8, %p2476_p7 }
  0x1d   : > { %p2479_p9 = pnand %p2478_p10, %p2472_p3 }
  0x1f   : > { %2482 = shalt.err (!%p2479_p9)
}
  0x20   : > { %s2483_s15 = scalar_lea.vmem %s2684_s22, 8192  ;;  %s2566_s19 = smov [#allocation2]  }
  0x21   : > { %p2484_p0 = scmp.ne.s32.totalorder %s2684_s22, %s2483_s15  ;;  %s2488_s21 = sshll.u32 %s2566_s19, 4  ;;  %s2489_s21 = int_to_ptr.vmem [resolvable:$false] %s2488_s21 }
  0x22   : > { %s2490_s9 = scalar_lea.vmem %s2489_s21, 16384  ;;  %p2491_p11 = scmp.lt.s32.totalorder %s2684_s22, %s2489_s21 }
  0x23   : > { %p2486_p2 = pnand %p2484_p0, %p2470_p1  ;;  %p2492_p4 = scmp.lt.s32.totalorder %s2490_s9, %s2483_s15 }
  0x25   : > { %p2487_p12 = pneg %p2486_p2  ;;  %p2493_p5 = por %p2492_p4, %p2491_p11 }
  0x27   : > { %p2494_p7 = pnand %p2493_p5, %p2487_p12 }
  0x29   : > { %2497 = shalt.err (!%p2494_p7)
}
  0x2a   : > { %s2567_s8 = smov 128   ;;  %s2568_s11 = smov 8  }
  0x2b   : > { %2424 = dma.hbm_to_vmem [thread:$0]  (!%p2680_p13), %s2676_s20, 8192, %s2684_s22, %s2686_s29, %s2567_s8, %s2567_s8, %s2568_s11  }
  0x2c   : > { %p2001_p9 = scmp.ge.s32.totalorder %s2564_s27, 1  ;;  %p256_p1 = scmp.lt.s32.totalorder %s2564_s27, 3 }
  0x2e   : > { %p257_p3 = pnand %p2001_p9, %p256_p1 }
  0x2f   : > { %s2717_s16 = sand.u32 (!%p257_p3), 1, %s2556_s25  }
  0x30   : > { %260 = sbr.rel (%p257_p3) target bundleno = 726 (0x2d6), region = 48  ;;  %s2002_s17 = sshll.u32 (!%p257_p3), %s2717_s16, 9 }
  0x31   : > { %s263_s18 = scalar_lea.sflag (!%p257_p3), [#allocation3], %s2717_s16  ;;  %s2721_s15 = scalar_lea.vmem (!%p257_p3), [#allocation2], %s2002_s17 }
  0x37   : > { %2543 = dma.done.wait (%p2656_p6), %s263_s18, 8192  }
  0x38   : > { %2545 = vsyncadd (%p2656_p6), %s263_s18, 4294959104  ;;  %vm428_vm0 = vcmask 64512   ;;  %v427_v0 = vld [vmem:[%s3716_s4] sm:$0xff]  ;;  %v412_v2 = vld [vmem:[%s3715_s3 + $0x8] sm:$0xff]  ;;  %v2569_v34 = vmov 0.0   ;;  %s2416_s18 = smul.u32 24576, %s2634_s28 }
  0x39   : > { %v411_v1 = vld [vmem:[%s3715_s3] sm:$0xff]  ;;  %2155 = vmatprep.subr.mxu0 %v427_v0  ;;  %v413_v3 = vld [vmem:[%s3715_s3 + $0x10] sm:$0xff]  ;;  %v414_v4 = vld [vmem:[%s3715_s3 + $0x18] sm:$0xff]  ;;  %s1908_s29 = scalar_lea.sflag [#allocation4], %s2717_s16  ;;  %p3726_p11 = scmp.ne.s32.totalorder %s3723_s13, 0 }
  0x3a   : > { %2157 = vmatprep.mubr.msk.f32.mxu0 %vm428_vm0, %v411_v1  ;;  %2156 = vmatpush3.msra.mxu0 %v427_v0  ;;  %v415_v5 = vld [vmem:[%s3715_s3 + $0x20] sm:$0xff]  ;;  %v623_v8 = vld [vmem:[%s3717_s5 + $0x8] sm:$0xff]  ;;  %v624_v9 = vld [vmem:[%s3717_s5 + $0x10] sm:$0xff]  ;;  %s3660_s23 = scalar_lea.hbm %s3719_s7, %s2416_s18  ;;  %s2570_s21 = smov [#allocation5]  }
  0x3b   : > { %2158 = vmatmul.mubr.msk.f32.vlgmr.msra.gmra.mrb[0].mxu0 %vm428_vm0, %v412_v2  ;;  %v638_v6 = vld [vmem:[%s3718_s6] sm:$0xff]  ;;  %v416_v10 = vld [vmem:[%s3715_s3 + $0x28] sm:$0xff]  ;;  %v417_v11 = vld [vmem:[%s3715_s3 + $0x30] sm:$0xff]  ;;  %s2502_s9 = sshll.u32 %s2570_s21, 4  ;;  %s2503_s9 = int_to_ptr.vmem [resolvable:$false] %s2502_s9 }
  0x3c   : > { %2160 = vmatprep.mubr.msk.f32.mxu0 %vm428_vm0, %v413_v3  ;;  %2181 = vmatprep.subr.mxu1 %v638_v6  ;;  %v622_v7 = vld [vmem:[%s3717_s5] sm:$0xff]  ;;  %v625_v12 = vld [vmem:[%s3717_s5 + $0x18] sm:$0xff]  ;;  %v627_v16 = vld [vmem:[%s3717_s5 + $0x28] sm:$0xff]  ;;  %s2504_s8 = scalar_lea.vmem %s2503_s9, 49152 }
  0x3d   : > { %2182 = vmatpush3.msra.mxu1 %v638_v6  ;;  %2183 = vmatprep.mubr.msk.f32.mxu1 %vm428_vm0, %v622_v7  ;;  %v626_v13 = vld [vmem:[%s3717_s5 + $0x20] sm:$0xff]  ;;  %v418_v14 = vld [vmem:[%s3715_s3 + $0x38] sm:$0xff]  ;;  %v628_v17 = vld [vmem:[%s3717_s5 + $0x30] sm:$0xff] }
  0x3e   : > { %2184 = vmatmul.mubr.msk.f32.vlgmr.msra.gmra.mrb[0].mxu1 %vm428_vm0, %v623_v8  ;;  %v419_v15 = vld [vmem:[%s3715_s3 + $0x40] sm:$0xff]  ;;  %v420_v18 = vld [vmem:[%s3715_s3 + $0x48] sm:$0xff]  ;;  %v421_v19 = vld [vmem:[%s3715_s3 + $0x50] sm:$0xff] }
  0x3f   : > { %2161 = vmatmul.mubr.msk.f32.gmra.mrb[2].mxu0 %vm428_vm0, %v414_v4  ;;  %2186 = vmatprep.mubr.msk.f32.mxu1 %vm428_vm0, %v624_v9  ;;  %v629_v20 = vld [vmem:[%s3717_s5 + $0x38] sm:$0xff]  ;;  %v630_v21 = vld [vmem:[%s3717_s5 + $0x40] sm:$0xff]  ;;  %v631_v24 = vld [vmem:[%s3717_s5 + $0x48] sm:$0xff] }
  0x40   : > { %2163 = vmatprep.mubr.msk.f32.mxu0 %vm428_vm0, %v415_v5  ;;  %v422_v22 = vld [vmem:[%s3715_s3 + $0x58] sm:$0xff]  ;;  %v423_v23 = vld [vmem:[%s3715_s3 + $0x60] sm:$0xff]  ;;  %v632_v25 = vld [vmem:[%s3717_s5 + $0x50] sm:$0xff] }
  0x41   : > { %v424_v26 = vld [vmem:[%s3715_s3 + $0x68] sm:$0xff]  ;;  %v425_v27 = vld [vmem:[%s3715_s3 + $0x70] sm:$0xff]  ;;  %v633_v28 = vld [vmem:[%s3717_s5 + $0x58] sm:$0xff] }
  0x42   : > { %2187 = vmatmul.mubr.msk.f32.gmra.mrb[2].mxu1 %vm428_vm0, %v625_v12  ;;  %v634_v29 = vld [vmem:[%s3717_s5 + $0x60] sm:$0xff]  ;;  %v426_v30 = vld [vmem:[%s3715_s3 + $0x78] sm:$0xff]  ;;  %v635_v31 = vld [vmem:[%s3717_s5 + $0x68] sm:$0xff] }
  0x43   : > { %2164 = vmatmul.mubr.msk.f32.gmra.mrb[4].mxu0 %vm428_vm0, %v416_v10  ;;  %2189 = vmatprep.mubr.msk.f32.mxu1 %vm428_vm0, %v626_v13  ;;  %v636_v32 = vld [vmem:[%s3717_s5 + $0x70] sm:$0xff]  ;;  %v637_v33 = vld [vmem:[%s3717_s5 + $0x78] sm:$0xff]  ;;  %v367_v35 = vld [vmem:[%s3713_s1 + $0x20] sm:$0xff] }
  0x44   : > { %2166 = vmatprep.mubr.msk.f32.mxu0 %vm428_vm0, %v417_v11  ;;  %v364_v36 = vld [vmem:[%s3713_s1 + $0x8] sm:$0xff]  ;;  %v363_v38 = vld [vmem:[%s3713_s1] sm:$0xff]  ;;  %v366_v39 = vld [vmem:[%s3713_s1 + $0x18] sm:$0xff] }
  0x45   : > { %v373_v43 = vld [vmem:[%s3713_s1 + $0x50] sm:$0xff]  ;;  %v370_v44 = vld [vmem:[%s3713_s1 + $0x38] sm:$0xff]  ;;  %v2337_v45 = vpack.c.bf16 %v366_v39, %v363_v38  ;;  %v372_v49 = vld [vmem:[%s3713_s1 + $0x48] sm:$0xff] }
  0x46   : > { %2190 = vmatmul.mubr.msk.f32.gmra.mrb[4].mxu1 %vm428_vm0, %v627_v16  ;;  %v369_v48 = vld [vmem:[%s3713_s1 + $0x30] sm:$0xff]  ;;  %v368_v50 = vld [vmem:[%s3713_s1 + $0x28] sm:$0xff]  ;;  %v379_v55 = vld [vmem:[%s3713_s1 + $0x80] sm:$0xff] }
  0x47   : > { %2167 = vmatmul.mubr.msk.f32.gmra.mrb[6].mxu0 %vm428_vm0, %v418_v14  ;;  %2192 = vmatprep.mubr.msk.f32.mxu1 %vm428_vm0, %v628_v17  ;;  %v365_v53 = vld [vmem:[%s3713_s1 + $0x10] sm:$0xff]  ;;  %v376_v57 = vld [vmem:[%s3713_s1 + $0x68] sm:$0xff]  ;;  %v2341_v58 = vpack.c.bf16 %v372_v49, %v369_v48  ;;  %v375_v63 = vld [vmem:[%s3713_s1 + $0x60] sm:$0xff] }
  0x48   : > { %2169 = vmatprep.mubr.msk.f32.mxu0 %vm428_vm0, %v419_v15  ;;  %v378_v0 = vld [vmem:[%s3713_s1 + $0x78] sm:$0xff]  ;;  %v371_v5 = vld [vmem:[%s3713_s1 + $0x40] sm:$0xff]  ;;  %v385_v7 = vld [vmem:[%s3713_s1 + $0xb0] sm:$0xff] }
  0x49   : > { %v374_v2 = vld [vmem:[%s3713_s1 + $0x58] sm:$0xff]  ;;  %v2345_v11 = vpack.c.bf16 %v378_v0, %v375_v63  ;;  %v381_v16 = vld [vmem:[%s3713_s1 + $0x90] sm:$0xff]  ;;  %v384_v17 = vld [vmem:[%s3713_s1 + $0xa8] sm:$0xff] }
  0x4a   : > { %2193 = vmatmul.mubr.msk.f32.gmra.mrb[6].mxu1 %vm428_vm0, %v629_v20  ;;  %v382_v10 = vld [vmem:[%s3713_s1 + $0x98] sm:$0xff] }
  0x4b   : > { %2170 = vmatmul.mubr.msk.f32.gmra.mrb[8].mxu0 %vm428_vm0, %v420_v18  ;;  %2195 = vmatprep.mubr.msk.f32.mxu1 %vm428_vm0, %v630_v21 }
  0x4c   : > { %2172 = vmatprep.mubr.msk.f32.mxu0 %vm428_vm0, %v421_v19  ;;  %v380_v19 = vld [vmem:[%s3713_s1 + $0x88] sm:$0xff] }
  0x4e   : > { %2196 = vmatmul.mubr.msk.f32.gmra.mrb[8].mxu1 %vm428_vm0, %v631_v24  ;;  %v391_v24 = vld [vmem:[%s3713_s1 + $0xe0] sm:$0xff] }
  0x4f   : > { %2173 = vmatmul.mubr.msk.f32.gmra.mrb[10].mxu0 %vm428_vm0, %v422_v22  ;;  %2198 = vmatprep.mubr.msk.f32.mxu1 %vm428_vm0, %v632_v25  ;;  %v377_v22 = vld [vmem:[%s3713_s1 + $0x70] sm:$0xff] }
  0x50   : > { %2175 = vmatprep.mubr.msk.f32.mxu0 %vm428_vm0, %v423_v23 }
  0x52   : > { %2199 = vmatmul.mubr.msk.f32.gmra.mrb[10].mxu1 %vm428_vm0, %v633_v28  ;;  %v2349_v28 = vpack.c.bf16 %v384_v17, %v381_v16  ;;  %v406_v16 = vld [vmem:[%s3713_s1 + $0x158] sm:$0xff] }
  0x53   : > { %2176 = vmatmul.mubr.msk.f32.gmra.mrb[12].mxu0 %vm428_vm0, %v424_v26  ;;  %2201 = vmatprep.mubr.msk.f32.mxu1 %vm428_vm0, %v634_v29 }
  0x54   : > { %2178 = vmatprep.mubr.msk.f32.mxu0 %vm428_vm0, %v425_v27  ;;  %v388_v27 = vld [vmem:[%s3713_s1 + $0xc8] sm:$0xff] }
  0x56   : > { %2202 = vmatmul.mubr.msk.f32.gmra.mrb[12].mxu1 %vm428_vm0, %v635_v31 }
  0x57   : > { %2179 = vmatmul.mubr.msk.f32.gmra.mrb[14].mxu0 %vm428_vm0, %v426_v30  ;;  %2204 = vmatprep.mubr.msk.f32.mxu1 %vm428_vm0, %v636_v32 }
  0x58   : > { %945 = vmatprep.mubr.f32.mxu0 %v2569_v34 }
  0x5a   : > { %2205 = vmatmul.mubr.msk.f32.gmra.mrb[14].mxu1 %vm428_vm0, %v637_v33  ;;  %v387_v33 = vld [vmem:[%s3713_s1 + $0xc0] sm:$0xff] }
  0x5b   : > { %1233 = vmatprep.mubr.f32.mxu1 %v2569_v34 }
 0x10e   : > { %v2159_v37 = vpop.f32.mrb[0].mxu0 }
 0x10f   : > { %v833_v40 = vadd.f32 %v2159_v37, %v367_v35  ;;  %v543_v41 = vpop.f32.mrb[1].mxu0  ;;  %v390_v35 = vld [vmem:[%s3713_s1 + $0xd8] sm:$0xff] }
 0x110   : > { %v832_v42 = vadd.f32 %v543_v41, %v364_v36  ;;  %v386_v37 = vld [vmem:[%s3713_s1 + $0xb8] sm:$0xff] }
 0x111   : > { %v2185_v56 = vpop.f32.mrb[0].mxu1 }
 0x112   : > { %v2335_v46 = vpack.c.bf16 %v833_v40, %v832_v42  ;;  %v2162_v47 = vpop.f32.mrb[2].mxu0  ;;  %v849_v59 = vadd.f32 %v2185_v56, %v368_v50  ;;  %v753_v60 = vpop.f32.mrb[1].mxu1  ;;  %v383_v40 = vld [vmem:[%s3713_s1 + $0xa0] sm:$0xff]  ;;  %v397_v42 = vld [vmem:[%s3713_s1 + $0x110] sm:$0xff] }
 0x113   : > { %v835_v51 = vadd.f32 %v2162_v47, %v373_v43  ;;  %v553_v52 = vpop.f32.mrb[3].mxu0  ;;  %v848_v1 = vadd.f32 %v753_v60, %v365_v53 }
 0x114   : > { %v834_v54 = vadd.f32 %v553_v52, %v370_v44  ;;  %2336 = vmatprep.subr.bf16.mxu0 %v2335_v46  ;;  %2399 = vmatprep.subr.bf16.mxu1 %v2335_v46  ;;  %v2353_v46 = vpack.c.bf16 %v390_v35, %v387_v33  ;;  %v396_v52 = vld [vmem:[%s3713_s1 + $0x108] sm:$0xff] }
 0x115   : > { %2338 = vmatpush1.bf16.msra.mxu0 %v2337_v45  ;;  %2407 = vmatpush1.bf16.msra.mxu1 %v2337_v45  ;;  %v2914_v8 = vpack.c.bf16 %v849_v59, %v848_v1  ;;  %v2188_v9 = vpop.f32.mrb[2].mxu1  ;;  %v394_v45 = vld [vmem:[%s3713_s1 + $0xf8] sm:$0xff]  ;;  %v403_v59 = vld [vmem:[%s3713_s1 + $0x140] sm:$0xff] }
 0x116   : > { %v2339_v61 = vpack.c.bf16 %v835_v51, %v834_v54  ;;  %v2165_v62 = vpop.f32.mrb[4].mxu0  ;;  %v851_v12 = vadd.f32 %v2188_v9, %v374_v2  ;;  %v763_v13 = vpop.f32.mrb[3].mxu1  ;;  %v393_v51 = vld [vmem:[%s3713_s1 + $0xf0] sm:$0xff]  ;;  %v392_v54 = vld [vmem:[%s3713_s1 + $0xe8] sm:$0xff] }
 0x117   : > { %v837_v3 = vadd.f32 %v2165_v62, %v379_v55  ;;  %v563_v4 = vpop.f32.mrb[5].mxu0  ;;  %v850_v18 = vadd.f32 %v763_v13, %v371_v5  ;;  %v400_v62 = vld [vmem:[%s3713_s1 + $0x128] sm:$0xff]  ;;  %v2357_v63 = vpack.c.bf16 %v396_v52, %v393_v51  ;;  %v402_v5 = vld [vmem:[%s3713_s1 + $0x138] sm:$0xff]  ;;  %v409_v13 = vld [vmem:[%s3713_s1 + $0x170] sm:$0xff] }
 0x118   : > { %v836_v6 = vadd.f32 %v563_v4, %v376_v57  ;;  %2340 = vmatprep.subr.bf16.mxu0 %v2339_v61  ;;  %2400 = vmatprep.subr.bf16.mxu1 %v2339_v61  ;;  %v389_v57 = vld [vmem:[%s3713_s1 + $0xd0] sm:$0xff]  ;;  %v399_v4 = vld [vmem:[%s3713_s1 + $0x120] sm:$0xff]  ;;  %v3036_v51 = vld [vmem:[%s2721_s15 + $0x188] sm:$0xff] }
 0x119   : > { %2342 = vmatpush1.bf16.msra.mxu0 %v2341_v58  ;;  %2408 = vmatpush1.bf16.msra.mxu1 %v2341_v58  ;;  %v2934_v25 = vpack.c.bf16 %v851_v12, %v850_v18  ;;  %v2191_v26 = vpop.f32.mrb[4].mxu1  ;;  %v2361_v17 = vpack.c.bf16 %v402_v5, %v399_v4  ;;  %v3048_v52 = vld [vmem:[%s2721_s15 + $0x190] sm:$0xff]  ;;  %v3144_v4 = vld [vmem:[%s2721_s15 + $0x1d8] sm:$0xff]  ;;  %v311_v5 = vld [vmem:[%s2721_s15 + $0x60] sm:$0xff] }
 0x11a   : > { %v2343_v14 = vpack.c.bf16 %v837_v3, %v836_v6  ;;  %v2168_v15 = vpop.f32.mrb[6].mxu0  ;;  %v853_v29 = vadd.f32 %v2191_v26, %v380_v19  ;;  %v773_v30 = vpop.f32.mrb[5].mxu1  ;;  %v404_v26 = vld [vmem:[%s3713_s1 + $0x148] sm:$0xff] }
 0x11b   : > { %v839_v20 = vadd.f32 %v2168_v15, %v385_v7  ;;  %v573_v21 = vpop.f32.mrb[7].mxu0  ;;  %v852_v36 = vadd.f32 %v773_v30, %v377_v22  ;;  %v398_v7 = vld [vmem:[%s3713_s1 + $0x118] sm:$0xff]  ;;  %v405_v22 = vld [vmem:[%s3713_s1 + $0x150] sm:$0xff] }
 0x11c   : > { %v838_v23 = vadd.f32 %v573_v21, %v382_v10  ;;  %2344 = vmatprep.subr.bf16.mxu0 %v2343_v14  ;;  %2401 = vmatprep.subr.bf16.mxu1 %v2343_v14 }
 0x11d   : > { %2346 = vmatpush1.bf16.msra.mxu0 %v2345_v11  ;;  %2409 = vmatpush1.bf16.msra.mxu1 %v2345_v11  ;;  %v2954_v43 = vpack.c.bf16 %v853_v29, %v852_v36  ;;  %v2194_v44 = vpop.f32.mrb[6].mxu1  ;;  %v395_v11 = vld [vmem:[%s3713_s1 + $0x100] sm:$0xff]  ;;  %v401_v29 = vld [vmem:[%s3713_s1 + $0x130] sm:$0xff] }
 0x11e   : > { %v2347_v31 = vpack.c.bf16 %v839_v20, %v838_v23  ;;  %v2171_v32 = vpop.f32.mrb[8].mxu0  ;;  %v855_v47 = vadd.f32 %v2194_v44, %v386_v37  ;;  %v783_v48 = vpop.f32.mrb[7].mxu1  ;;  %v408_v23 = vld [vmem:[%s3713_s1 + $0x168] sm:$0xff]  ;;  %v3022_v44 = vld [vmem:[%s2721_s15] sm:$0xff] }
 0x11f   : > { %v841_v38 = vadd.f32 %v2171_v32, %v391_v24  ;;  %v583_v39 = vpop.f32.mrb[9].mxu0  ;;  %v854_v53 = vadd.f32 %v783_v48, %v383_v40  ;;  %v2365_v33 = vpack.c.bf16 %v408_v23, %v405_v22  ;;  %v407_v40 = vld [vmem:[%s3713_s1 + $0x160] sm:$0xff]  ;;  %v324_v23 = vld [vmem:[%s2721_s15 + $0xc8] sm:$0xff] }
 0x120   : > { %v840_v41 = vadd.f32 %v583_v39, %v388_v27  ;;  %2348 = vmatprep.subr.bf16.mxu0 %v2347_v31  ;;  %2402 = vmatprep.subr.bf16.mxu1 %v2347_v31  ;;  %v410_v39 = vld [vmem:[%s3713_s1 + $0x178] sm:$0xff]  ;;  %v323_v22 = vld [vmem:[%s2721_s15 + $0xc0] sm:$0xff] }
 0x121   : > { %2350 = vmatpush1.bf16.msra.mxu0 %v2349_v28  ;;  %2410 = vmatpush1.bf16.msra.mxu1 %v2349_v28  ;;  %v2974_v60 = vpack.c.bf16 %v855_v47, %v854_v53  ;;  %v2197_v61 = vpop.f32.mrb[8].mxu1  ;;  %v3057_v53 = vld [vmem:[%s2721_s15 + $0x18] sm:$0xff] }
 0x122   : > { %v2351_v49 = vpack.c.bf16 %v841_v38, %v840_v41  ;;  %v2174_v50 = vpop.f32.mrb[10].mxu0  ;;  %v857_v0 = vadd.f32 %v2197_v61, %v392_v54  ;;  %v793_v1 = vpop.f32.mrb[9].mxu1  ;;  %v3060_v54 = vld [vmem:[%s2721_s15 + $0x198] sm:$0xff]  ;;  %v3116_v61 = vld [vmem:[%s2721_s15 + $0x40] sm:$0xff] }
 0x123   : > { %v843_v55 = vadd.f32 %v2174_v50, %v397_v42  ;;  %v593_v56 = vpop.f32.mrb[11].mxu0  ;;  %v856_v6 = vadd.f32 %v793_v1, %v389_v57  ;;  %v3033_v50 = vld [vmem:[%s2721_s15 + $0x8] sm:$0xff]  ;;  %v3093_v57 = vld [vmem:[%s2721_s15 + $0x30] sm:$0xff] }
 0x124   : > { %v842_v58 = vadd.f32 %v593_v56, %v394_v45  ;;  %2352 = vmatprep.subr.bf16.mxu0 %v2351_v49  ;;  %2403 = vmatprep.subr.bf16.mxu1 %v2351_v49  ;;  %v3025_v45 = vld [vmem:[%s2721_s15 + $0x180] sm:$0xff]  ;;  %v3084_v56 = vld [vmem:[%s2721_s15 + $0x1a8] sm:$0xff]  ;;  %v309_v1 = vld [vmem:[%s2721_s15 + $0x50] sm:$0xff] }
 0x125   : > { %2354 = vmatpush1.bf16.msra.mxu0 %v2353_v46  ;;  %2411 = vmatpush1.bf16.msra.mxu1 %v2353_v46  ;;  %v2994_v14 = vpack.c.bf16 %v857_v0, %v856_v6  ;;  %v2200_v15 = vpop.f32.mrb[10].mxu1  ;;  %v3129_v0 = vld [vmem:[%s2721_s15 + $0x1c8] sm:$0xff]  ;;  %v3151_v6 = vld [vmem:[%s2721_s15 + $0x1e0] sm:$0xff] }
 0x126   : > { %v2355_v2 = vpack.c.bf16 %v843_v55, %v842_v58  ;;  %v2177_v3 = vpop.f32.mrb[12].mxu0  ;;  %v859_v18 = vadd.f32 %v2200_v15, %v398_v7  ;;  %v803_v19 = vpop.f32.mrb[11].mxu1  ;;  %v3072_v55 = vld [vmem:[%s2721_s15 + $0x1a0] sm:$0xff]  ;;  %v3096_v58 = vld [vmem:[%s2721_s15 + $0x1b0] sm:$0xff]  ;;  %v312_v7 = vld [vmem:[%s2721_s15 + $0x68] sm:$0xff] }
 0x127   : > { %v845_v9 = vadd.f32 %v2177_v3, %v403_v59  ;;  %v603_v10 = vpop.f32.mrb[13].mxu0  ;;  %v858_v24 = vadd.f32 %v803_v19, %v395_v11  ;;  %v3105_v59 = vld [vmem:[%s2721_s15 + $0x38] sm:$0xff]  ;;  %v3165_v11 = vld [vmem:[%s2721_s15 + $0x1f0] sm:$0xff]  ;;  %v316_v15 = vld [vmem:[%s2721_s15 + $0x88] sm:$0xff] }
 0x128   : > { %v844_v12 = vadd.f32 %v603_v10, %v400_v62  ;;  %2356 = vmatprep.subr.bf16.mxu0 %v2355_v2  ;;  %2404 = vmatprep.subr.bf16.mxu1 %v2355_v2  ;;  %v3119_v62 = vld [vmem:[%s2721_s15 + $0x1c0] sm:$0xff]  ;;  %v3137_v2 = vld [vmem:[%s2721_s15 + $0x1d0] sm:$0xff]  ;;  %v310_v3 = vld [vmem:[%s2721_s15 + $0x58] sm:$0xff] }
 0x129   : > { %2358 = vmatpush1.bf16.msra.mxu0 %v2357_v63  ;;  %2412 = vmatpush1.bf16.msra.mxu1 %v2357_v63  ;;  %v3011_v31 = vpack.c.bf16 %v859_v18, %v858_v24  ;;  %v2203_v32 = vpop.f32.mrb[12].mxu1  ;;  %v3126_v63 = vld [vmem:[%s2721_s15 + $0x48] sm:$0xff]  ;;  %v313_v10 = vld [vmem:[%s2721_s15 + $0x70] sm:$0xff]  ;;  %v319_v18 = vld [vmem:[%s2721_s15 + $0xa0] sm:$0xff] }
 0x12a   : > { %v2359_v20 = vpack.c.bf16 %v845_v9, %v844_v12  ;;  %v2180_v21 = vpop.f32.mrb[14].mxu0  ;;  %v861_v35 = vadd.f32 %v2203_v32, %v404_v26  ;;  %v813_v36 = vpop.f32.mrb[13].mxu1  ;;  %v3158_v9 = vld [vmem:[%s2721_s15 + $0x1e8] sm:$0xff]  ;;  %v314_v12 = vld [vmem:[%s2721_s15 + $0x78] sm:$0xff]  ;;  %v325_v24 = vld [vmem:[%s2721_s15 + $0xd0] sm:$0xff] }
 0x12b   : > { %v847_v27 = vadd.f32 %v2180_v21, %v409_v13  ;;  %v613_v28 = vpop.f32.mrb[15].mxu0  ;;  %v860_v38 = vadd.f32 %v813_v36, %v401_v29  ;;  %v3172_v13 = vld [vmem:[%s2721_s15 + $0x1f8] sm:$0xff]  ;;  %v320_v19 = vld [vmem:[%s2721_s15 + $0xa8] sm:$0xff]  ;;  %v329_v29 = vld [vmem:[%s2721_s15 + $0xf0] sm:$0xff] }
 0x12c   : > { %v846_v30 = vadd.f32 %v613_v28, %v406_v16  ;;  %2360 = vmatprep.subr.bf16.mxu0 %v2359_v20  ;;  %2405 = vmatprep.subr.bf16.mxu1 %v2359_v20  ;;  %v317_v16 = vld [vmem:[%s2721_s15 + $0x90] sm:$0xff]  ;;  %v322_v21 = vld [vmem:[%s2721_s15 + $0xb8] sm:$0xff]  ;;  %v328_v28 = vld [vmem:[%s2721_s15 + $0xe8] sm:$0xff] }
 0x12d   : > { %2362 = vmatpush1.bf16.msra.mxu0 %v2361_v17  ;;  %2413 = vmatpush1.bf16.msra.mxu1 %v2361_v17  ;;  %v3019_v41 = vpack.c.bf16 %v861_v35, %v860_v38  ;;  %v2206_v42 = vpop.f32.mrb[14].mxu1  ;;  %v318_v17 = vld [vmem:[%s2721_s15 + $0x98] sm:$0xff]  ;;  %v321_v20 = vld [vmem:[%s2721_s15 + $0xb0] sm:$0xff]  ;;  %v332_v32 = vld [vmem:[%s2721_s15 + $0x108] sm:$0xff] }
 0x12e   : > { %v2363_v37 = vpack.c.bf16 %v847_v27, %v846_v30  ;;  %v863_v46 = vadd.f32 %v2206_v42, %v410_v39  ;;  %v823_v47 = vpop.f32.mrb[15].mxu1  ;;  %v326_v26 = vld [vmem:[%s2721_s15 + $0xd8] sm:$0xff]  ;;  %v327_v27 = vld [vmem:[%s2721_s15 + $0xe0] sm:$0xff]  ;;  %v337_v38 = vld [vmem:[%s2721_s15 + $0x130] sm:$0xff] }
 0x12f   : > { %v862_v48 = vadd.f32 %v823_v47, %v407_v40  ;;  %v330_v30 = vld [vmem:[%s2721_s15 + $0xf8] sm:$0xff]  ;;  %v335_v36 = vld [vmem:[%s2721_s15 + $0x120] sm:$0xff]  ;;  %v340_v42 = vld [vmem:[%s2721_s15 + $0x148] sm:$0xff] }
 0x130   : > { %2364 = vmatprep.subr.bf16.mxu0 %v2363_v37  ;;  %2406 = vmatprep.subr.bf16.mxu1 %v2363_v37  ;;  %v334_v35 = vld [vmem:[%s2721_s15 + $0x118] sm:$0xff]  ;;  %v336_v37 = vld [vmem:[%s2721_s15 + $0x128] sm:$0xff]  ;;  %v339_v40 = vld [vmem:[%s2721_s15 + $0x140] sm:$0xff] }
 0x131   : > { %2366 = vmatpush1.bf16.msra.mxu0 %v2365_v33  ;;  %2414 = vmatpush1.bf16.msra.mxu1 %v2365_v33  ;;  %v2395_v49 = vpack.c.bf16 %v863_v46, %v862_v48  ;;  %v333_v33 = vld [vmem:[%s2721_s15 + $0x110] sm:$0xff]  ;;  %v338_v39 = vld [vmem:[%s2721_s15 + $0x138] sm:$0xff] }
 0x132   : > { %2368 = vmatprep.subr.bf16.mxu1 %v2914_v8  ;;  %v342_v48 = vld [vmem:[%s2721_s15 + $0x158] sm:$0xff] }
 0x134   : > { %946 = vmatmul.mubr.f32.vlgmr.msra.gmra.mrb[16].mxu0 %v3022_v44  ;;  %1234 = vmatmul.mubr.f32.vlgmr.msra.gmra.mrb[16].mxu1 %v3025_v45 }
 0x135   : > { %2370 = vmatpush3.bf16.msra.mxu1 %v2914_v8  ;;  %951 = vmatprep.mubr.f32.mxu0 %v2569_v34  ;;  %v3045_v8 = vld [vmem:[%s2721_s15 + $0x10] sm:$0xff] }
 0x136   : > { %1239 = vmatprep.mubr.f32.mxu1 %v2569_v34  ;;  %2372 = vmatprep.subr.bf16.mxu1 %v2934_v25 }
 0x138   : > { %952 = vmatmul.mubr.f32.gmra.mrb[18].mxu0 %v3033_v50  ;;  %1240 = vmatmul.mubr.f32.gmra.mrb[18].mxu1 %v3036_v51 }
 0x139   : > { %957 = vmatprep.mubr.f32.mxu0 %v2569_v34  ;;  %1245 = vmatprep.mubr.f32.mxu1 %v2569_v34 }
 0x13a   : > { %2374 = vmatpush3.bf16.msra.mxu1 %v2934_v25  ;;  %v3069_v25 = vld [vmem:[%s2721_s15 + $0x20] sm:$0xff] }
 0x13b   : > { %2376 = vmatprep.subr.bf16.mxu1 %v2954_v43 }
 0x13c   : > { %958 = vmatmul.mubr.f32.gmra.mrb[20].mxu0 %v3045_v8  ;;  %1246 = vmatmul.mubr.f32.gmra.mrb[20].mxu1 %v3048_v52 }
 0x13d   : > { %963 = vmatprep.mubr.f32.mxu0 %v2569_v34  ;;  %1251 = vmatprep.mubr.f32.mxu1 %v2569_v34 }
 0x13e   : > { %2378 = vmatpush3.bf16.msra.mxu1 %v2954_v43  ;;  %v3081_v43 = vld [vmem:[%s2721_s15 + $0x28] sm:$0xff] }
 0x13f   : > { %2380 = vmatprep.subr.bf16.mxu1 %v2974_v60 }
 0x140   : > { %964 = vmatmul.mubr.f32.gmra.mrb[22].mxu0 %v3057_v53  ;;  %1252 = vmatmul.mubr.f32.gmra.mrb[22].mxu1 %v3060_v54 }
 0x141   : > { %969 = vmatprep.mubr.f32.mxu0 %v2569_v34  ;;  %1257 = vmatprep.mubr.f32.mxu1 %v2569_v34 }
 0x142   : > { %2382 = vmatpush3.bf16.msra.mxu1 %v2974_v60  ;;  %v3108_v60 = vld [vmem:[%s2721_s15 + $0x1b8] sm:$0xff] }
 0x143   : > { %2384 = vmatprep.subr.bf16.mxu1 %v2994_v14 }
 0x144   : > { %970 = vmatmul.mubr.f32.gmra.mrb[24].mxu0 %v3069_v25  ;;  %1258 = vmatmul.mubr.f32.gmra.mrb[24].mxu1 %v3072_v55 }
 0x145   : > { %975 = vmatprep.mubr.f32.mxu0 %v2569_v34  ;;  %1263 = vmatprep.mubr.f32.mxu1 %v2569_v34 }
 0x146   : > { %2386 = vmatpush3.bf16.msra.mxu1 %v2994_v14  ;;  %v315_v14 = vld [vmem:[%s2721_s15 + $0x80] sm:$0xff] }
 0x147   : > { %2388 = vmatprep.subr.bf16.mxu1 %v3011_v31 }
 0x148   : > { %976 = vmatmul.mubr.f32.gmra.mrb[26].mxu0 %v3081_v43  ;;  %1264 = vmatmul.mubr.f32.gmra.mrb[26].mxu1 %v3084_v56 }
 0x149   : > { %981 = vmatprep.mubr.f32.mxu0 %v2569_v34  ;;  %1269 = vmatprep.mubr.f32.mxu1 %v2569_v34 }
 0x14a   : > { %2390 = vmatpush3.bf16.msra.mxu1 %v3011_v31  ;;  %v331_v31 = vld [vmem:[%s2721_s15 + $0x100] sm:$0xff] }
 0x14b   : > { %2392 = vmatprep.subr.bf16.mxu1 %v3019_v41 }
 0x14c   : > { %982 = vmatmul.mubr.f32.gmra.mrb[28].mxu0 %v3093_v57  ;;  %1270 = vmatmul.mubr.f32.gmra.mrb[28].mxu1 %v3096_v58 }
 0x14d   : > { %987 = vmatprep.mubr.f32.mxu0 %v2569_v34  ;;  %1275 = vmatprep.mubr.f32.mxu1 %v2569_v34 }
 0x14e   : > { %2394 = vmatpush3.bf16.msra.mxu1 %v3019_v41  ;;  %v866_v41 = vlaneseq }
 0x14f   : > { %2396 = vmatprep.subr.bf16.mxu1 %v2395_v49 }
 0x150   : > { %988 = vmatmul.mubr.f32.gmra.mrb[30].mxu0 %v3105_v59  ;;  %1276 = vmatmul.mubr.f32.gmra.mrb[30].mxu1 %v3108_v60  ;;  %v867_v46 = vshrl.u32 %v866_v41, 7 }
 0x151   : > { %993 = vmatprep.mubr.f32.mxu0 %v2569_v34  ;;  %1281 = vmatprep.mubr.f32.mxu1 %v2569_v34 }
 0x152   : > { %2398 = vmatpush3.bf16.msra.mxu1 %v2395_v49  ;;  %v876_v47 = vsub.s32 2, %v867_v46  ;;  %v864_v49 = vld [vmem:[%s3714_s2] sm:$0x7] }
 0x154   : > { %994 = vmatmul.mubr.f32.gmra.mrb[32].mxu0 %v3116_v61  ;;  %1282 = vmatmul.mubr.f32.gmra.mrb[32].mxu1 %v3119_v62 }
 0x155   : > { %999 = vmatprep.mubr.f32.mxu0 %v2569_v34  ;;  %1287 = vmatprep.mubr.f32.mxu1 %v2569_v34 }
 0x158   : > { %1000 = vmatmul.mubr.f32.gmra.mrb[34].mxu0 %v3126_v63  ;;  %1288 = vmatmul.mubr.f32.gmra.mrb[34].mxu1 %v3129_v0 }
 0x159   : > { %1005 = vmatprep.mubr.f32.mxu0 %v2569_v34  ;;  %1293 = vmatprep.mubr.f32.mxu1 %v2569_v34 }
 0x15c   : > { %1006 = vmatmul.mubr.f32.gmra.mrb[36].mxu0 %v309_v1  ;;  %1294 = vmatmul.mubr.f32.gmra.mrb[36].mxu1 %v3137_v2 }
 0x15d   : > { %1011 = vmatprep.mubr.f32.mxu0 %v2569_v34  ;;  %1299 = vmatprep.mubr.f32.mxu1 %v2569_v34 }
 0x160   : > { %1012 = vmatmul.mubr.f32.gmra.mrb[38].mxu0 %v310_v3  ;;  %1300 = vmatmul.mubr.f32.gmra.mrb[38].mxu1 %v3144_v4 }
 0x161   : > { %1017 = vmatprep.mubr.f32.mxu0 %v2569_v34  ;;  %1305 = vmatprep.mubr.f32.mxu1 %v2569_v34 }
 0x164   : > { %1018 = vmatmul.mubr.f32.gmra.mrb[40].mxu0 %v311_v5  ;;  %1306 = vmatmul.mubr.f32.gmra.mrb[40].mxu1 %v3151_v6 }
 0x165   : > { %1023 = vmatprep.mubr.f32.mxu0 %v2569_v34  ;;  %1311 = vmatprep.mubr.f32.mxu1 %v2569_v34 }
 0x168   : > { %1024 = vmatmul.mubr.f32.gmra.mrb[42].mxu0 %v312_v7  ;;  %1312 = vmatmul.mubr.f32.gmra.mrb[42].mxu1 %v3158_v9 }
 0x169   : > { %1029 = vmatprep.mubr.f32.mxu0 %v2569_v34  ;;  %1317 = vmatprep.mubr.f32.mxu1 %v2569_v34 }
 0x16c   : > { %1030 = vmatmul.mubr.f32.gmra.mrb[44].mxu0 %v313_v10  ;;  %1318 = vmatmul.mubr.f32.gmra.mrb[44].mxu1 %v3165_v11 }
 0x16d   : > { %1035 = vmatprep.mubr.f32.mxu0 %v2569_v34  ;;  %1323 = vmatprep.mubr.f32.mxu1 %v2569_v34 }
 0x170   : > { %1036 = vmatmul.mubr.f32.gmra.mrb[46].mxu0 %v314_v12  ;;  %1324 = vmatmul.mubr.f32.gmra.mrb[46].mxu1 %v3172_v13 }
 0x171   : > { %1041 = vmatprep.mubr.f32.mxu0 %v2569_v34  ;;  %2239 = vmatprep.mubr.f32.mxu1 %v3022_v44  ;;  %v341_v44 = vld [vmem:[%s2721_s15 + $0x150] sm:$0xff] }
 0x174   : > { %1042 = vmatmul.mubr.f32.gmra.mrb[48].mxu0 %v315_v14  ;;  %2240 = vmatmul.mubr.f32.vlgmr.msra.gmra.mrb[48].mxu1 %v3033_v50  ;;  %v343_v50 = vld [vmem:[%s2721_s15 + $0x160] sm:$0xff] }
 0x175   : > { %1047 = vmatprep.mubr.f32.mxu0 %v2569_v34  ;;  %2242 = vmatprep.mubr.f32.mxu1 %v3045_v8  ;;  %v3239_v8 = vrot.slane %v864_v49, %v876_v47 }
 0x178   : > { %1048 = vmatmul.mubr.f32.gmra.mrb[50].mxu0 %v316_v15  ;;  %2243 = vmatmul.mubr.f32.gmra.mrb[50].mxu1 %v3057_v53  ;;  %v344_v53 = vld [vmem:[%s2721_s15 + $0x168] sm:$0xff] }
 0x179   : > { %1053 = vmatprep.mubr.f32.mxu0 %v2569_v34  ;;  %2245 = vmatprep.mubr.f32.mxu1 %v3069_v25  ;;  %v345_v25 = vld [vmem:[%s2721_s15 + $0x170] sm:$0xff] }
 0x17c   : > { %1054 = vmatmul.mubr.f32.gmra.mrb[52].mxu0 %v317_v16  ;;  %2246 = vmatmul.mubr.f32.gmra.mrb[52].mxu1 %v3081_v43  ;;  %v346_v43 = vld [vmem:[%s2721_s15 + $0x178] sm:$0xff]  ;;  %s2415_s15 = smul.u32 1536, %s2717_s16 }
 0x17d   : > { %1059 = vmatprep.mubr.f32.mxu0 %v2569_v34  ;;  %2248 = vmatprep.mubr.f32.mxu1 %v3093_v57 }
 0x17e   : > { %s3279_s17 = scalar_lea.vmem [#allocation5], %s2415_s15 }
 0x17f   : > { %s1922_s20 = sshll.u32 %s3279_s17, 4  ;;  %s3662_s20 = int_to_ptr.vmem [resolvable:$true] %s1922_s20 }
 0x180   : > { %1060 = vmatmul.mubr.f32.gmra.mrb[54].mxu0 %v318_v17  ;;  %2249 = vmatmul.mubr.f32.gmra.mrb[54].mxu1 %v3105_v59  ;;  %s2498_s19 = scalar_lea.vmem %s3662_s20, 24576  ;;  %p2505_p8 = scmp.lt.s32.totalorder %s3662_s20, %s2503_s9 }
 0x181   : > { %1065 = vmatprep.mubr.f32.mxu0 %v2569_v34  ;;  %2251 = vmatprep.mubr.f32.mxu1 %v3116_v61  ;;  %p2499_p6 = scmp.ne.s32.totalorder %s3662_s20, %s2498_s19  ;;  %p2506_p10 = scmp.lt.s32.totalorder %s2504_s8, %s2498_s19 }
 0x183   : > { %p2500_p12 = pnand %p2499_p6, %p3726_p11  ;;  %p2507_p0 = por %p2506_p10, %p2505_p8 }
 0x184   : > { %1066 = vmatmul.mubr.f32.gmra.mrb[56].mxu0 %v319_v18  ;;  %2252 = vmatmul.mubr.f32.gmra.mrb[56].mxu1 %v3126_v63 }
 0x185   : > { %1071 = vmatprep.mubr.f32.mxu0 %v2569_v34  ;;  %2254 = vmatprep.mubr.f32.mxu1 %v309_v1  ;;  %p2501_p13 = pneg %p2500_p12 }
 0x187   : > { %p2508_p2 = pnand %p2507_p0, %p2501_p13 }
 0x188   : > { %1072 = vmatmul.mubr.f32.gmra.mrb[58].mxu0 %v320_v19  ;;  %2255 = vmatmul.mubr.f32.gmra.mrb[58].mxu1 %v310_v3 }
 0x189   : > { %1077 = vmatprep.mubr.f32.mxu0 %v2569_v34  ;;  %2257 = vmatprep.mubr.f32.mxu1 %v311_v5 }
 0x18c   : > { %1078 = vmatmul.mubr.f32.gmra.mrb[60].mxu0 %v321_v20  ;;  %2258 = vmatmul.mubr.f32.gmra.mrb[60].mxu1 %v312_v7 }
 0x18d   : > { %1083 = vmatprep.mubr.f32.mxu0 %v2569_v34  ;;  %2260 = vmatprep.mubr.f32.mxu1 %v313_v10 }
 0x190   : > { %1084 = vmatmul.mubr.f32.gmra.mrb[62].mxu0 %v322_v21  ;;  %2261 = vmatmul.mubr.f32.gmra.mrb[62].mxu1 %v314_v12 }
 0x191   : > { %1089 = vmatprep.mubr.f32.mxu0 %v2569_v34  ;;  %2263 = vmatprep.mubr.f32.mxu1 %v315_v14 }
 0x194   : > { %1090 = vmatmul.mubr.f32.gmra.mrb[64].mxu0 %v323_v22  ;;  %2264 = vmatmul.mubr.f32.gmra.mrb[64].mxu1 %v316_v15 }
 0x195   : > { %1095 = vmatprep.mubr.f32.mxu0 %v2569_v34  ;;  %2266 = vmatprep.mubr.f32.mxu1 %v317_v16 }
 0x198   : > { %1096 = vmatmul.mubr.f32.gmra.mrb[66].mxu0 %v324_v23  ;;  %2267 = vmatmul.mubr.f32.gmra.mrb[66].mxu1 %v318_v17 }
 0x199   : > { %1101 = vmatprep.mubr.f32.mxu0 %v2569_v34  ;;  %2269 = vmatprep.mubr.f32.mxu1 %v319_v18 }
 0x19c   : > { %1102 = vmatmul.mubr.f32.gmra.mrb[68].mxu0 %v325_v24  ;;  %2270 = vmatmul.mubr.f32.gmra.mrb[68].mxu1 %v320_v19 }
 0x19d   : > { %1107 = vmatprep.mubr.f32.mxu0 %v2569_v34  ;;  %2272 = vmatprep.mubr.f32.mxu1 %v321_v20 }
 0x1a0   : > { %1108 = vmatmul.mubr.f32.gmra.mrb[70].mxu0 %v326_v26  ;;  %2273 = vmatmul.mubr.f32.gmra.mrb[70].mxu1 %v322_v21 }
 0x1a1   : > { %1113 = vmatprep.mubr.f32.mxu0 %v2569_v34  ;;  %2275 = vmatprep.mubr.f32.mxu1 %v323_v22 }
 0x1a4   : > { %1114 = vmatmul.mubr.f32.gmra.mrb[72].mxu0 %v327_v27  ;;  %2276 = vmatmul.mubr.f32.gmra.mrb[72].mxu1 %v324_v23 }
 0x1a5   : > { %1119 = vmatprep.mubr.f32.mxu0 %v2569_v34  ;;  %2278 = vmatprep.mubr.f32.mxu1 %v325_v24 }
 0x1a8   : > { %1120 = vmatmul.mubr.f32.gmra.mrb[74].mxu0 %v328_v28  ;;  %2279 = vmatmul.mubr.f32.gmra.mrb[74].mxu1 %v326_v26 }
 0x1a9   : > { %1125 = vmatprep.mubr.f32.mxu0 %v2569_v34  ;;  %2281 = vmatprep.mubr.f32.mxu1 %v327_v27 }
 0x1ac   : > { %1126 = vmatmul.mubr.f32.gmra.mrb[76].mxu0 %v329_v29  ;;  %2282 = vmatmul.mubr.f32.gmra.mrb[76].mxu1 %v328_v28 }
 0x1ad   : > { %1131 = vmatprep.mubr.f32.mxu0 %v2569_v34  ;;  %2284 = vmatprep.mubr.f32.mxu1 %v329_v29 }
 0x1b0   : > { %1132 = vmatmul.mubr.f32.gmra.mrb[78].mxu0 %v330_v30  ;;  %2285 = vmatmul.mubr.f32.gmra.mrb[78].mxu1 %v330_v30 }
 0x1b1   : > { %1137 = vmatprep.mubr.f32.mxu0 %v2569_v34  ;;  %2287 = vmatprep.mubr.f32.mxu1 %v331_v31 }
 0x1b4   : > { %1138 = vmatmul.mubr.f32.gmra.mrb[80].mxu0 %v331_v31  ;;  %2288 = vmatmul.mubr.f32.gmra.mrb[80].mxu1 %v332_v32 }
 0x1b5   : > { %1143 = vmatprep.mubr.f32.mxu0 %v2569_v34  ;;  %2290 = vmatprep.mubr.f32.mxu1 %v333_v33 }
 0x1b8   : > { %1144 = vmatmul.mubr.f32.gmra.mrb[82].mxu0 %v332_v32  ;;  %2291 = vmatmul.mubr.f32.gmra.mrb[82].mxu1 %v334_v35 }
 0x1b9   : > { %1149 = vmatprep.mubr.f32.mxu0 %v2569_v34  ;;  %2293 = vmatprep.mubr.f32.mxu1 %v335_v36 }
 0x1bc   : > { %1150 = vmatmul.mubr.f32.gmra.mrb[84].mxu0 %v333_v33  ;;  %2294 = vmatmul.mubr.f32.gmra.mrb[84].mxu1 %v336_v37 }
 0x1bd   : > { %1155 = vmatprep.mubr.f32.mxu0 %v2569_v34  ;;  %2296 = vmatprep.mubr.f32.mxu1 %v337_v38 }
 0x1c0   : > { %1156 = vmatmul.mubr.f32.gmra.mrb[86].mxu0 %v334_v35  ;;  %2297 = vmatmul.mubr.f32.gmra.mrb[86].mxu1 %v338_v39 }
 0x1c1   : > { %1161 = vmatprep.mubr.f32.mxu0 %v2569_v34  ;;  %2299 = vmatprep.mubr.f32.mxu1 %v339_v40 }
 0x1c4   : > { %1162 = vmatmul.mubr.f32.gmra.mrb[88].mxu0 %v335_v36  ;;  %2300 = vmatmul.mubr.f32.gmra.mrb[88].mxu1 %v340_v42 }
 0x1c5   : > { %1167 = vmatprep.mubr.f32.mxu0 %v2569_v34  ;;  %2302 = vmatprep.mubr.f32.mxu1 %v341_v44 }
 0x1c8   : > { %1168 = vmatmul.mubr.f32.gmra.mrb[90].mxu0 %v336_v37  ;;  %2303 = vmatmul.mubr.f32.gmra.mrb[90].mxu1 %v342_v48 }
 0x1c9   : > { %1173 = vmatprep.mubr.f32.mxu0 %v2569_v34  ;;  %2305 = vmatprep.mubr.f32.mxu1 %v343_v50 }
 0x1cc   : > { %1174 = vmatmul.mubr.f32.gmra.mrb[92].mxu0 %v337_v38  ;;  %2306 = vmatmul.mubr.f32.gmra.mrb[92].mxu1 %v344_v53 }
 0x1cd   : > { %1179 = vmatprep.mubr.f32.mxu0 %v2569_v34  ;;  %2308 = vmatprep.mubr.f32.mxu1 %v345_v25 }
 0x1d0   : > { %1180 = vmatmul.mubr.f32.gmra.mrb[94].mxu0 %v338_v39  ;;  %2309 = vmatmul.mubr.f32.gmra.mrb[94].mxu1 %v346_v43 }
 0x1d1   : > { %1185 = vmatprep.mubr.f32.mxu0 %v2569_v34  ;;  %2311 = vmatprep.mubr.f32.mxu1 %v3025_v45  ;;  %v868_v45 = vsub.s32 0, %v867_v46 }
 0x1d4   : > { %1186 = vmatmul.mubr.f32.gmra.mrb[96].mxu0 %v339_v40  ;;  %2312 = vmatmul.mubr.f32.gmra.mrb[96].mxu1 %v3036_v51  ;;  %v872_v51 = vsub.s32 1, %v867_v46 }
 0x1d5   : > { %1191 = vmatprep.mubr.f32.mxu0 %v2569_v34  ;;  %2314 = vmatprep.mubr.f32.mxu1 %v3048_v52  ;;  %v3271_v52 = vrot.slane %v864_v49, %v868_v45 }
 0x1d8   : > { %1192 = vmatmul.mubr.f32.gmra.mrb[98].mxu0 %v340_v42  ;;  %2315 = vmatmul.mubr.f32.gmra.mrb[98].mxu1 %v3060_v54  ;;  %v3273_v54 = vrot.slane %v864_v49, %v872_v51 }
 0x1d9   : > { %1197 = vmatprep.mubr.f32.mxu0 %v2569_v34  ;;  %2317 = vmatprep.mubr.f32.mxu1 %v3072_v55 }
 0x1dc   : > { %1198 = vmatmul.mubr.f32.gmra.mrb[100].mxu0 %v341_v44  ;;  %2318 = vmatmul.mubr.f32.gmra.mrb[100].mxu1 %v3084_v56 }
 0x1dd   : > { %1203 = vmatprep.mubr.f32.mxu0 %v2569_v34  ;;  %2320 = vmatprep.mubr.f32.mxu1 %v3096_v58 }
 0x1e0   : > { %1204 = vmatmul.mubr.f32.gmra.mrb[102].mxu0 %v342_v48  ;;  %2321 = vmatmul.mubr.f32.gmra.mrb[102].mxu1 %v3108_v60 }
 0x1e1   : > { %1209 = vmatprep.mubr.f32.mxu0 %v2569_v34  ;;  %2323 = vmatprep.mubr.f32.mxu1 %v3119_v62 }
 0x1e4   : > { %1210 = vmatmul.mubr.f32.gmra.mrb[104].mxu0 %v343_v50  ;;  %2324 = vmatmul.mubr.f32.gmra.mrb[104].mxu1 %v3129_v0 }
 0x1e5   : > { %1215 = vmatprep.mubr.f32.mxu0 %v2569_v34  ;;  %2326 = vmatprep.mubr.f32.mxu1 %v3137_v2 }
 0x1e8   : > { %1216 = vmatmul.mubr.f32.gmra.mrb[106].mxu0 %v344_v53  ;;  %2327 = vmatmul.mubr.f32.gmra.mrb[106].mxu1 %v3144_v4 }
 0x1e9   : > { %1221 = vmatprep.mubr.f32.mxu0 %v2569_v34  ;;  %2329 = vmatprep.mubr.f32.mxu1 %v3151_v6 }
 0x1ec   : > { %1222 = vmatmul.mubr.f32.gmra.mrb[108].mxu0 %v345_v25  ;;  %2330 = vmatmul.mubr.f32.gmra.mrb[108].mxu1 %v3158_v9 }
 0x1ed   : > { %1227 = vmatprep.mubr.f32.mxu0 %v2569_v34  ;;  %2332 = vmatprep.mubr.f32.mxu1 %v3165_v11 }
 0x1f0   : > { %1228 = vmatmul.mubr.f32.gmra.mrb[110].mxu0 %v346_v43  ;;  %2333 = vmatmul.mubr.f32.gmra.mrb[110].mxu1 %v3172_v13 }
 0x207   : > { %v947_v55 = vpop.f32.mrb[16].mxu0  ;;  %v1235_v56 = vpop.f32.mrb[16].mxu1 }
 0x208   : > { %v948_v57 = vadd.f32 %v947_v55, %v3271_v52  ;;  %v1236_v58 = vadd.f32 %v1235_v56, %v3271_v52  ;;  %v949_v59 = vpop.f32.mrb[17].mxu0  ;;  %v1237_v34 = vpop.f32.mrb[17].mxu1 }
 0x209   : > { %v950_v60 = vadd.f32 %v949_v59, %v3273_v54  ;;  %v1238_v61 = vadd.f32 %v1237_v34, %v3273_v54 }
 0x20a   : > { %1715 = vst [vmem:[%s3279_s17] sm:$0xff] %v948_v57  ;;  %1859 = vst [vmem:[%s3279_s17 + $0x480] sm:$0xff] %v1236_v58 }
 0x20b   : > { %1716 = vst [vmem:[%s3279_s17 + $0x8] sm:$0xff] %v950_v60  ;;  %1860 = vst [vmem:[%s3279_s17 + $0x488] sm:$0xff] %v1238_v61  ;;  %v953_v62 = vpop.f32.mrb[18].mxu0  ;;  %v1241_v63 = vpop.f32.mrb[18].mxu1 }
 0x20c   : > { %v954_v0 = vadd.f32 %v953_v62, %v3271_v52  ;;  %v1242_v1 = vadd.f32 %v1241_v63, %v3271_v52  ;;  %v955_v2 = vpop.f32.mrb[19].mxu0  ;;  %v1243_v3 = vpop.f32.mrb[19].mxu1 }
 0x20d   : > { %v956_v4 = vadd.f32 %v955_v2, %v3273_v54  ;;  %v1244_v5 = vadd.f32 %v1243_v3, %v3273_v54 }
 0x20e   : > { %1718 = vst [vmem:[%s3279_s17 + $0x18] sm:$0xff] %v954_v0  ;;  %1862 = vst [vmem:[%s3279_s17 + $0x498] sm:$0xff] %v1242_v1 }
 0x20f   : > { %1719 = vst [vmem:[%s3279_s17 + $0x20] sm:$0xff] %v956_v4  ;;  %1863 = vst [vmem:[%s3279_s17 + $0x4a0] sm:$0xff] %v1244_v5  ;;  %v959_v6 = vpop.f32.mrb[20].mxu0  ;;  %v1247_v7 = vpop.f32.mrb[20].mxu1 }
 0x210   : > { %v960_v9 = vadd.f32 %v959_v6, %v3271_v52  ;;  %v1248_v10 = vadd.f32 %v1247_v7, %v3271_v52  ;;  %v961_v11 = vpop.f32.mrb[21].mxu0  ;;  %v1249_v12 = vpop.f32.mrb[21].mxu1 }
 0x211   : > { %v962_v13 = vadd.f32 %v961_v11, %v3273_v54  ;;  %v1250_v14 = vadd.f32 %v1249_v12, %v3273_v54 }
 0x212   : > { %1721 = vst [vmem:[%s3279_s17 + $0x30] sm:$0xff] %v960_v9  ;;  %1865 = vst [vmem:[%s3279_s17 + $0x4b0] sm:$0xff] %v1248_v10 }
 0x213   : > { %1722 = vst [vmem:[%s3279_s17 + $0x38] sm:$0xff] %v962_v13  ;;  %1866 = vst [vmem:[%s3279_s17 + $0x4b8] sm:$0xff] %v1250_v14  ;;  %v965_v15 = vpop.f32.mrb[22].mxu0  ;;  %v1253_v16 = vpop.f32.mrb[22].mxu1 }
 0x214   : > { %v966_v17 = vadd.f32 %v965_v15, %v3271_v52  ;;  %v1254_v18 = vadd.f32 %v1253_v16, %v3271_v52  ;;  %v967_v19 = vpop.f32.mrb[23].mxu0  ;;  %v1255_v20 = vpop.f32.mrb[23].mxu1 }
 0x215   : > { %v968_v21 = vadd.f32 %v967_v19, %v3273_v54  ;;  %v1256_v22 = vadd.f32 %v1255_v20, %v3273_v54 }
 0x216   : > { %1724 = vst [vmem:[%s3279_s17 + $0x48] sm:$0xff] %v966_v17  ;;  %1868 = vst [vmem:[%s3279_s17 + $0x4c8] sm:$0xff] %v1254_v18 }
 0x217   : > { %1725 = vst [vmem:[%s3279_s17 + $0x50] sm:$0xff] %v968_v21  ;;  %1869 = vst [vmem:[%s3279_s17 + $0x4d0] sm:$0xff] %v1256_v22  ;;  %v971_v23 = vpop.f32.mrb[24].mxu0  ;;  %v1259_v24 = vpop.f32.mrb[24].mxu1 }
 0x218   : > { %v972_v26 = vadd.f32 %v971_v23, %v3271_v52  ;;  %v1260_v27 = vadd.f32 %v1259_v24, %v3271_v52  ;;  %v973_v28 = vpop.f32.mrb[25].mxu0  ;;  %v1261_v29 = vpop.f32.mrb[25].mxu1 }
 0x219   : > { %v974_v30 = vadd.f32 %v973_v28, %v3273_v54  ;;  %v1262_v31 = vadd.f32 %v1261_v29, %v3273_v54 }
 0x21a   : > { %1727 = vst [vmem:[%s3279_s17 + $0x60] sm:$0xff] %v972_v26  ;;  %1871 = vst [vmem:[%s3279_s17 + $0x4e0] sm:$0xff] %v1260_v27 }
 0x21b   : > { %1728 = vst [vmem:[%s3279_s17 + $0x68] sm:$0xff] %v974_v30  ;;  %1872 = vst [vmem:[%s3279_s17 + $0x4e8] sm:$0xff] %v1262_v31  ;;  %v977_v32 = vpop.f32.mrb[26].mxu0  ;;  %v1265_v33 = vpop.f32.mrb[26].mxu1 }
 0x21c   : > { %v978_v35 = vadd.f32 %v977_v32, %v3271_v52  ;;  %v1266_v36 = vadd.f32 %v1265_v33, %v3271_v52  ;;  %v979_v37 = vpop.f32.mrb[27].mxu0  ;;  %v1267_v38 = vpop.f32.mrb[27].mxu1 }
 0x21d   : > { %v980_v39 = vadd.f32 %v979_v37, %v3273_v54  ;;  %v1268_v40 = vadd.f32 %v1267_v38, %v3273_v54 }
 0x21e   : > { %1730 = vst [vmem:[%s3279_s17 + $0x78] sm:$0xff] %v978_v35  ;;  %1874 = vst [vmem:[%s3279_s17 + $0x4f8] sm:$0xff] %v1266_v36 }
 0x21f   : > { %1731 = vst [vmem:[%s3279_s17 + $0x80] sm:$0xff] %v980_v39  ;;  %1875 = vst [vmem:[%s3279_s17 + $0x500] sm:$0xff] %v1268_v40  ;;  %v983_v41 = vpop.f32.mrb[28].mxu0  ;;  %v1271_v42 = vpop.f32.mrb[28].mxu1 }
 0x220   : > { %v984_v44 = vadd.f32 %v983_v41, %v3271_v52  ;;  %v1272_v46 = vadd.f32 %v1271_v42, %v3271_v52  ;;  %v985_v47 = vpop.f32.mrb[29].mxu0  ;;  %v1273_v48 = vpop.f32.mrb[29].mxu1 }
 0x221   : > { %v986_v49 = vadd.f32 %v985_v47, %v3273_v54  ;;  %v1274_v50 = vadd.f32 %v1273_v48, %v3273_v54 }
 0x222   : > { %1733 = vst [vmem:[%s3279_s17 + $0x90] sm:$0xff] %v984_v44  ;;  %1877 = vst [vmem:[%s3279_s17 + $0x510] sm:$0xff] %v1272_v46 }
 0x223   : > { %1734 = vst [vmem:[%s3279_s17 + $0x98] sm:$0xff] %v986_v49  ;;  %1878 = vst [vmem:[%s3279_s17 + $0x518] sm:$0xff] %v1274_v50  ;;  %v989_v53 = vpop.f32.mrb[30].mxu0  ;;  %v1277_v25 = vpop.f32.mrb[30].mxu1 }
 0x224   : > { %v990_v43 = vadd.f32 %v989_v53, %v3271_v52  ;;  %v1278_v45 = vadd.f32 %v1277_v25, %v3271_v52  ;;  %v991_v51 = vpop.f32.mrb[31].mxu0  ;;  %v1279_v55 = vpop.f32.mrb[31].mxu1 }
 0x225   : > { %v992_v56 = vadd.f32 %v991_v51, %v3273_v54  ;;  %v1280_v57 = vadd.f32 %v1279_v55, %v3273_v54 }
 0x226   : > { %1736 = vst [vmem:[%s3279_s17 + $0xa8] sm:$0xff] %v990_v43  ;;  %1880 = vst [vmem:[%s3279_s17 + $0x528] sm:$0xff] %v1278_v45 }
 0x227   : > { %1737 = vst [vmem:[%s3279_s17 + $0xb0] sm:$0xff] %v992_v56  ;;  %1881 = vst [vmem:[%s3279_s17 + $0x530] sm:$0xff] %v1280_v57  ;;  %v995_v58 = vpop.f32.mrb[32].mxu0  ;;  %v1283_v59 = vpop.f32.mrb[32].mxu1 }
 0x228   : > { %v996_v34 = vadd.f32 %v995_v58, %v3271_v52  ;;  %v1284_v60 = vadd.f32 %v1283_v59, %v3271_v52  ;;  %v997_v61 = vpop.f32.mrb[33].mxu0  ;;  %v1285_v62 = vpop.f32.mrb[33].mxu1 }
 0x229   : > { %v998_v63 = vadd.f32 %v997_v61, %v3273_v54  ;;  %v1286_v0 = vadd.f32 %v1285_v62, %v3273_v54 }
 0x22a   : > { %1739 = vst [vmem:[%s3279_s17 + $0xc0] sm:$0xff] %v996_v34  ;;  %1883 = vst [vmem:[%s3279_s17 + $0x540] sm:$0xff] %v1284_v60 }
 0x22b   : > { %1740 = vst [vmem:[%s3279_s17 + $0xc8] sm:$0xff] %v998_v63  ;;  %1884 = vst [vmem:[%s3279_s17 + $0x548] sm:$0xff] %v1286_v0  ;;  %v1001_v1 = vpop.f32.mrb[34].mxu0  ;;  %v1289_v2 = vpop.f32.mrb[34].mxu1 }
 0x22c   : > { %v1002_v3 = vadd.f32 %v1001_v1, %v3271_v52  ;;  %v1290_v4 = vadd.f32 %v1289_v2, %v3271_v52  ;;  %v1003_v5 = vpop.f32.mrb[35].mxu0  ;;  %v1291_v6 = vpop.f32.mrb[35].mxu1 }
 0x22d   : > { %v1004_v7 = vadd.f32 %v1003_v5, %v3273_v54  ;;  %v1292_v9 = vadd.f32 %v1291_v6, %v3273_v54 }
 0x22e   : > { %1742 = vst [vmem:[%s3279_s17 + $0xd8] sm:$0xff] %v1002_v3  ;;  %1886 = vst [vmem:[%s3279_s17 + $0x558] sm:$0xff] %v1290_v4 }
 0x22f   : > { %1743 = vst [vmem:[%s3279_s17 + $0xe0] sm:$0xff] %v1004_v7  ;;  %1887 = vst [vmem:[%s3279_s17 + $0x560] sm:$0xff] %v1292_v9  ;;  %v1007_v10 = vpop.f32.mrb[36].mxu0  ;;  %v1295_v11 = vpop.f32.mrb[36].mxu1 }
 0x230   : > { %v1008_v12 = vadd.f32 %v1007_v10, %v3271_v52  ;;  %v1296_v13 = vadd.f32 %v1295_v11, %v3271_v52  ;;  %v1009_v14 = vpop.f32.mrb[37].mxu0  ;;  %v1297_v15 = vpop.f32.mrb[37].mxu1 }
 0x231   : > { %v1010_v16 = vadd.f32 %v1009_v14, %v3273_v54  ;;  %v1298_v17 = vadd.f32 %v1297_v15, %v3273_v54 }
 0x232   : > { %1745 = vst [vmem:[%s3279_s17 + $0xf0] sm:$0xff] %v1008_v12  ;;  %1889 = vst [vmem:[%s3279_s17 + $0x570] sm:$0xff] %v1296_v13 }
 0x233   : > { %1746 = vst [vmem:[%s3279_s17 + $0xf8] sm:$0xff] %v1010_v16  ;;  %1890 = vst [vmem:[%s3279_s17 + $0x578] sm:$0xff] %v1298_v17  ;;  %v1013_v18 = vpop.f32.mrb[38].mxu0  ;;  %v1301_v19 = vpop.f32.mrb[38].mxu1 }
 0x234   : > { %v1014_v20 = vadd.f32 %v1013_v18, %v3271_v52  ;;  %v1302_v21 = vadd.f32 %v1301_v19, %v3271_v52  ;;  %v1015_v22 = vpop.f32.mrb[39].mxu0  ;;  %v1303_v23 = vpop.f32.mrb[39].mxu1 }
 0x235   : > { %v1016_v24 = vadd.f32 %v1015_v22, %v3273_v54  ;;  %v1304_v26 = vadd.f32 %v1303_v23, %v3273_v54 }
 0x236   : > { %1748 = vst [vmem:[%s3279_s17 + $0x108] sm:$0xff] %v1014_v20  ;;  %1892 = vst [vmem:[%s3279_s17 + $0x588] sm:$0xff] %v1302_v21 }
 0x237   : > { %1749 = vst [vmem:[%s3279_s17 + $0x110] sm:$0xff] %v1016_v24  ;;  %1893 = vst [vmem:[%s3279_s17 + $0x590] sm:$0xff] %v1304_v26  ;;  %v1019_v27 = vpop.f32.mrb[40].mxu0  ;;  %v1307_v28 = vpop.f32.mrb[40].mxu1 }
 0x238   : > { %v1020_v29 = vadd.f32 %v1019_v27, %v3271_v52  ;;  %v1308_v30 = vadd.f32 %v1307_v28, %v3271_v52  ;;  %v1021_v31 = vpop.f32.mrb[41].mxu0  ;;  %v1309_v32 = vpop.f32.mrb[41].mxu1 }
 0x239   : > { %v1022_v33 = vadd.f32 %v1021_v31, %v3273_v54  ;;  %v1310_v35 = vadd.f32 %v1309_v32, %v3273_v54 }
 0x23a   : > { %1751 = vst [vmem:[%s3279_s17 + $0x120] sm:$0xff] %v1020_v29  ;;  %1895 = vst [vmem:[%s3279_s17 + $0x5a0] sm:$0xff] %v1308_v30 }
 0x23b   : > { %1752 = vst [vmem:[%s3279_s17 + $0x128] sm:$0xff] %v1022_v33  ;;  %1896 = vst [vmem:[%s3279_s17 + $0x5a8] sm:$0xff] %v1310_v35  ;;  %v1025_v36 = vpop.f32.mrb[42].mxu0  ;;  %v1313_v37 = vpop.f32.mrb[42].mxu1 }
 0x23c   : > { %v1026_v38 = vadd.f32 %v1025_v36, %v3271_v52  ;;  %v1314_v39 = vadd.f32 %v1313_v37, %v3271_v52  ;;  %v1027_v40 = vpop.f32.mrb[43].mxu0  ;;  %v1315_v41 = vpop.f32.mrb[43].mxu1 }
 0x23d   : > { %v1028_v42 = vadd.f32 %v1027_v40, %v3273_v54  ;;  %v1316_v44 = vadd.f32 %v1315_v41, %v3273_v54 }
 0x23e   : > { %1754 = vst [vmem:[%s3279_s17 + $0x138] sm:$0xff] %v1026_v38  ;;  %1898 = vst [vmem:[%s3279_s17 + $0x5b8] sm:$0xff] %v1314_v39 }
 0x23f   : > { %1755 = vst [vmem:[%s3279_s17 + $0x140] sm:$0xff] %v1028_v42  ;;  %1899 = vst [vmem:[%s3279_s17 + $0x5c0] sm:$0xff] %v1316_v44  ;;  %v1031_v46 = vpop.f32.mrb[44].mxu0  ;;  %v1319_v47 = vpop.f32.mrb[44].mxu1 }
 0x240   : > { %v1032_v48 = vadd.f32 %v1031_v46, %v3271_v52  ;;  %v1320_v49 = vadd.f32 %v1319_v47, %v3271_v52  ;;  %v1033_v50 = vpop.f32.mrb[45].mxu0  ;;  %v1321_v53 = vpop.f32.mrb[45].mxu1 }
 0x241   : > { %v1034_v25 = vadd.f32 %v1033_v50, %v3273_v54  ;;  %v1322_v43 = vadd.f32 %v1321_v53, %v3273_v54 }
 0x242   : > { %1757 = vst [vmem:[%s3279_s17 + $0x150] sm:$0xff] %v1032_v48  ;;  %1901 = vst [vmem:[%s3279_s17 + $0x5d0] sm:$0xff] %v1320_v49 }
 0x243   : > { %1758 = vst [vmem:[%s3279_s17 + $0x158] sm:$0xff] %v1034_v25  ;;  %1902 = vst [vmem:[%s3279_s17 + $0x5d8] sm:$0xff] %v1322_v43  ;;  %v1037_v45 = vpop.f32.mrb[46].mxu0  ;;  %v1325_v51 = vpop.f32.mrb[46].mxu1 }
 0x244   : > { %v1038_v55 = vadd.f32 %v1037_v45, %v3271_v52  ;;  %v1326_v56 = vadd.f32 %v1325_v51, %v3271_v52  ;;  %v1039_v57 = vpop.f32.mrb[47].mxu0  ;;  %v1327_v58 = vpop.f32.mrb[47].mxu1 }
 0x245   : > { %v1040_v59 = vadd.f32 %v1039_v57, %v3273_v54  ;;  %v1328_v34 = vadd.f32 %v1327_v58, %v3273_v54 }
 0x246   : > { %1760 = vst [vmem:[%s3279_s17 + $0x168] sm:$0xff] %v1038_v55  ;;  %1904 = vst [vmem:[%s3279_s17 + $0x5e8] sm:$0xff] %v1326_v56 }
 0x247   : > { %1761 = vst [vmem:[%s3279_s17 + $0x170] sm:$0xff] %v1040_v59  ;;  %1905 = vst [vmem:[%s3279_s17 + $0x5f0] sm:$0xff] %v1328_v34  ;;  %v1043_v60 = vpop.f32.mrb[48].mxu0  ;;  %v2241_v61 = vpop.f32.mrb[48].mxu1 }
 0x248   : > { %v1044_v62 = vadd.f32 %v1043_v60, %v3271_v52  ;;  %v1402_v63 = vadd.f32 %v2241_v61, %v3239_v8  ;;  %v1045_v0 = vpop.f32.mrb[49].mxu0  ;;  %v1396_v1 = vpop.f32.mrb[49].mxu1 }
 0x249   : > { %v1046_v2 = vadd.f32 %v1045_v0, %v3273_v54  ;;  %v1397_v3 = vadd.f32 %v1396_v1, %v3239_v8 }
 0x24a   : > { %1763 = vst [vmem:[%s3279_s17 + $0x180] sm:$0xff] %v1044_v62  ;;  %1720 = vst [vmem:[%s3279_s17 + $0x28] sm:$0xff] %v1402_v63 }
 0x24b   : > { %1764 = vst [vmem:[%s3279_s17 + $0x188] sm:$0xff] %v1046_v2  ;;  %1717 = vst [vmem:[%s3279_s17 + $0x10] sm:$0xff] %v1397_v3  ;;  %v1049_v4 = vpop.f32.mrb[50].mxu0  ;;  %v2244_v5 = vpop.f32.mrb[50].mxu1 }
 0x24c   : > { %v1050_v6 = vadd.f32 %v1049_v4, %v3271_v52  ;;  %v1412_v7 = vadd.f32 %v2244_v5, %v3239_v8  ;;  %v1051_v9 = vpop.f32.mrb[51].mxu0  ;;  %v1406_v10 = vpop.f32.mrb[51].mxu1 }
 0x24d   : > { %v1052_v11 = vadd.f32 %v1051_v9, %v3273_v54  ;;  %v1407_v12 = vadd.f32 %v1406_v10, %v3239_v8 }
 0x24e   : > { %1766 = vst [vmem:[%s3279_s17 + $0x198] sm:$0xff] %v1050_v6  ;;  %1726 = vst [vmem:[%s3279_s17 + $0x58] sm:$0xff] %v1412_v7 }
 0x24f   : > { %1767 = vst [vmem:[%s3279_s17 + $0x1a0] sm:$0xff] %v1052_v11  ;;  %1723 = vst [vmem:[%s3279_s17 + $0x40] sm:$0xff] %v1407_v12  ;;  %v1055_v13 = vpop.f32.mrb[52].mxu0  ;;  %v2247_v14 = vpop.f32.mrb[52].mxu1 }
 0x250   : > { %v1056_v15 = vadd.f32 %v1055_v13, %v3271_v52  ;;  %v1422_v16 = vadd.f32 %v2247_v14, %v3239_v8  ;;  %v1057_v17 = vpop.f32.mrb[53].mxu0  ;;  %v1416_v18 = vpop.f32.mrb[53].mxu1 }
 0x251   : > { %v1058_v19 = vadd.f32 %v1057_v17, %v3273_v54  ;;  %v1417_v20 = vadd.f32 %v1416_v18, %v3239_v8 }
 0x252   : > { %1769 = vst [vmem:[%s3279_s17 + $0x1b0] sm:$0xff] %v1056_v15  ;;  %1732 = vst [vmem:[%s3279_s17 + $0x88] sm:$0xff] %v1422_v16 }
 0x253   : > { %1770 = vst [vmem:[%s3279_s17 + $0x1b8] sm:$0xff] %v1058_v19  ;;  %1729 = vst [vmem:[%s3279_s17 + $0x70] sm:$0xff] %v1417_v20  ;;  %v1061_v21 = vpop.f32.mrb[54].mxu0  ;;  %v2250_v22 = vpop.f32.mrb[54].mxu1 }
 0x254   : > { %v1062_v23 = vadd.f32 %v1061_v21, %v3271_v52  ;;  %v1432_v24 = vadd.f32 %v2250_v22, %v3239_v8  ;;  %v1063_v26 = vpop.f32.mrb[55].mxu0  ;;  %v1426_v27 = vpop.f32.mrb[55].mxu1 }
 0x255   : > { %v1064_v28 = vadd.f32 %v1063_v26, %v3273_v54  ;;  %v1427_v29 = vadd.f32 %v1426_v27, %v3239_v8 }
 0x256   : > { %1772 = vst [vmem:[%s3279_s17 + $0x1c8] sm:$0xff] %v1062_v23  ;;  %1738 = vst [vmem:[%s3279_s17 + $0xb8] sm:$0xff] %v1432_v24 }
 0x257   : > { %1773 = vst [vmem:[%s3279_s17 + $0x1d0] sm:$0xff] %v1064_v28  ;;  %1735 = vst [vmem:[%s3279_s17 + $0xa0] sm:$0xff] %v1427_v29  ;;  %v1067_v30 = vpop.f32.mrb[56].mxu0  ;;  %v2253_v31 = vpop.f32.mrb[56].mxu1 }
 0x258   : > { %v1068_v32 = vadd.f32 %v1067_v30, %v3271_v52  ;;  %v1442_v33 = vadd.f32 %v2253_v31, %v3239_v8  ;;  %v1069_v35 = vpop.f32.mrb[57].mxu0  ;;  %v1436_v36 = vpop.f32.mrb[57].mxu1 }
 0x259   : > { %v1070_v37 = vadd.f32 %v1069_v35, %v3273_v54  ;;  %v1437_v38 = vadd.f32 %v1436_v36, %v3239_v8 }
 0x25a   : > { %1775 = vst [vmem:[%s3279_s17 + $0x1e0] sm:$0xff] %v1068_v32  ;;  %1744 = vst [vmem:[%s3279_s17 + $0xe8] sm:$0xff] %v1442_v33 }
 0x25b   : > { %1776 = vst [vmem:[%s3279_s17 + $0x1e8] sm:$0xff] %v1070_v37  ;;  %1741 = vst [vmem:[%s3279_s17 + $0xd0] sm:$0xff] %v1437_v38  ;;  %v1073_v39 = vpop.f32.mrb[58].mxu0  ;;  %v2256_v40 = vpop.f32.mrb[58].mxu1 }
 0x25c   : > { %v1074_v41 = vadd.f32 %v1073_v39, %v3271_v52  ;;  %v1452_v42 = vadd.f32 %v2256_v40, %v3239_v8  ;;  %v1075_v44 = vpop.f32.mrb[59].mxu0  ;;  %v1446_v46 = vpop.f32.mrb[59].mxu1 }
 0x25d   : > { %v1076_v47 = vadd.f32 %v1075_v44, %v3273_v54  ;;  %v1447_v48 = vadd.f32 %v1446_v46, %v3239_v8 }
 0x25e   : > { %1778 = vst [vmem:[%s3279_s17 + $0x1f8] sm:$0xff] %v1074_v41  ;;  %1750 = vst [vmem:[%s3279_s17 + $0x118] sm:$0xff] %v1452_v42 }
 0x25f   : > { %1779 = vst [vmem:[%s3279_s17 + $0x200] sm:$0xff] %v1076_v47  ;;  %1747 = vst [vmem:[%s3279_s17 + $0x100] sm:$0xff] %v1447_v48  ;;  %v1079_v49 = vpop.f32.mrb[60].mxu0  ;;  %v2259_v50 = vpop.f32.mrb[60].mxu1 }
 0x260   : > { %v1080_v53 = vadd.f32 %v1079_v49, %v3271_v52  ;;  %v1462_v25 = vadd.f32 %v2259_v50, %v3239_v8  ;;  %v1081_v43 = vpop.f32.mrb[61].mxu0  ;;  %v1456_v45 = vpop.f32.mrb[61].mxu1 }
 0x261   : > { %v1082_v51 = vadd.f32 %v1081_v43, %v3273_v54  ;;  %v1457_v55 = vadd.f32 %v1456_v45, %v3239_v8 }
 0x262   : > { %1781 = vst [vmem:[%s3279_s17 + $0x210] sm:$0xff] %v1080_v53  ;;  %1756 = vst [vmem:[%s3279_s17 + $0x148] sm:$0xff] %v1462_v25 }
 0x263   : > { %1782 = vst [vmem:[%s3279_s17 + $0x218] sm:$0xff] %v1082_v51  ;;  %1753 = vst [vmem:[%s3279_s17 + $0x130] sm:$0xff] %v1457_v55  ;;  %v1085_v56 = vpop.f32.mrb[62].mxu0  ;;  %v2262_v57 = vpop.f32.mrb[62].mxu1 }
 0x264   : > { %v1086_v58 = vadd.f32 %v1085_v56, %v3271_v52  ;;  %v1472_v59 = vadd.f32 %v2262_v57, %v3239_v8  ;;  %v1087_v34 = vpop.f32.mrb[63].mxu0  ;;  %v1466_v60 = vpop.f32.mrb[63].mxu1 }
 0x265   : > { %v1088_v61 = vadd.f32 %v1087_v34, %v3273_v54  ;;  %v1467_v62 = vadd.f32 %v1466_v60, %v3239_v8 }
 0x266   : > { %1784 = vst [vmem:[%s3279_s17 + $0x228] sm:$0xff] %v1086_v58  ;;  %1762 = vst [vmem:[%s3279_s17 + $0x178] sm:$0xff] %v1472_v59 }
 0x267   : > { %1785 = vst [vmem:[%s3279_s17 + $0x230] sm:$0xff] %v1088_v61  ;;  %1759 = vst [vmem:[%s3279_s17 + $0x160] sm:$0xff] %v1467_v62  ;;  %v1091_v63 = vpop.f32.mrb[64].mxu0  ;;  %v2265_v0 = vpop.f32.mrb[64].mxu1 }
 0x268   : > { %v1092_v1 = vadd.f32 %v1091_v63, %v3271_v52  ;;  %v1482_v2 = vadd.f32 %v2265_v0, %v3239_v8  ;;  %v1093_v3 = vpop.f32.mrb[65].mxu0  ;;  %v1476_v4 = vpop.f32.mrb[65].mxu1 }
 0x269   : > { %v1094_v5 = vadd.f32 %v1093_v3, %v3273_v54  ;;  %v1477_v6 = vadd.f32 %v1476_v4, %v3239_v8 }
 0x26a   : > { %1787 = vst [vmem:[%s3279_s17 + $0x240] sm:$0xff] %v1092_v1  ;;  %1768 = vst [vmem:[%s3279_s17 + $0x1a8] sm:$0xff] %v1482_v2 }
 0x26b   : > { %1788 = vst [vmem:[%s3279_s17 + $0x248] sm:$0xff] %v1094_v5  ;;  %1765 = vst [vmem:[%s3279_s17 + $0x190] sm:$0xff] %v1477_v6  ;;  %v1097_v7 = vpop.f32.mrb[66].mxu0  ;;  %v2268_v9 = vpop.f32.mrb[66].mxu1 }
 0x26c   : > { %v1098_v10 = vadd.f32 %v1097_v7, %v3271_v52  ;;  %v1492_v11 = vadd.f32 %v2268_v9, %v3239_v8  ;;  %v1099_v12 = vpop.f32.mrb[67].mxu0  ;;  %v1486_v13 = vpop.f32.mrb[67].mxu1 }
 0x26d   : > { %v1100_v14 = vadd.f32 %v1099_v12, %v3273_v54  ;;  %v1487_v15 = vadd.f32 %v1486_v13, %v3239_v8 }
 0x26e   : > { %1790 = vst [vmem:[%s3279_s17 + $0x258] sm:$0xff] %v1098_v10  ;;  %1774 = vst [vmem:[%s3279_s17 + $0x1d8] sm:$0xff] %v1492_v11 }
 0x26f   : > { %1791 = vst [vmem:[%s3279_s17 + $0x260] sm:$0xff] %v1100_v14  ;;  %1771 = vst [vmem:[%s3279_s17 + $0x1c0] sm:$0xff] %v1487_v15  ;;  %v1103_v16 = vpop.f32.mrb[68].mxu0  ;;  %v2271_v17 = vpop.f32.mrb[68].mxu1 }
 0x270   : > { %v1104_v18 = vadd.f32 %v1103_v16, %v3271_v52  ;;  %v1502_v19 = vadd.f32 %v2271_v17, %v3239_v8  ;;  %v1105_v20 = vpop.f32.mrb[69].mxu0  ;;  %v1496_v21 = vpop.f32.mrb[69].mxu1 }
 0x271   : > { %v1106_v22 = vadd.f32 %v1105_v20, %v3273_v54  ;;  %v1497_v23 = vadd.f32 %v1496_v21, %v3239_v8 }
 0x272   : > { %1793 = vst [vmem:[%s3279_s17 + $0x270] sm:$0xff] %v1104_v18  ;;  %1780 = vst [vmem:[%s3279_s17 + $0x208] sm:$0xff] %v1502_v19 }
 0x273   : > { %1794 = vst [vmem:[%s3279_s17 + $0x278] sm:$0xff] %v1106_v22  ;;  %1777 = vst [vmem:[%s3279_s17 + $0x1f0] sm:$0xff] %v1497_v23  ;;  %v1109_v24 = vpop.f32.mrb[70].mxu0  ;;  %v2274_v26 = vpop.f32.mrb[70].mxu1 }
 0x274   : > { %v1110_v27 = vadd.f32 %v1109_v24, %v3271_v52  ;;  %v1512_v28 = vadd.f32 %v2274_v26, %v3239_v8  ;;  %v1111_v29 = vpop.f32.mrb[71].mxu0  ;;  %v1506_v30 = vpop.f32.mrb[71].mxu1 }
 0x275   : > { %v1112_v31 = vadd.f32 %v1111_v29, %v3273_v54  ;;  %v1507_v32 = vadd.f32 %v1506_v30, %v3239_v8 }
 0x276   : > { %1796 = vst [vmem:[%s3279_s17 + $0x288] sm:$0xff] %v1110_v27  ;;  %1786 = vst [vmem:[%s3279_s17 + $0x238] sm:$0xff] %v1512_v28 }
 0x277   : > { %1797 = vst [vmem:[%s3279_s17 + $0x290] sm:$0xff] %v1112_v31  ;;  %1783 = vst [vmem:[%s3279_s17 + $0x220] sm:$0xff] %v1507_v32  ;;  %v1115_v33 = vpop.f32.mrb[72].mxu0  ;;  %v2277_v35 = vpop.f32.mrb[72].mxu1 }
 0x278   : > { %v1116_v36 = vadd.f32 %v1115_v33, %v3271_v52  ;;  %v1522_v37 = vadd.f32 %v2277_v35, %v3239_v8  ;;  %v1117_v38 = vpop.f32.mrb[73].mxu0  ;;  %v1516_v39 = vpop.f32.mrb[73].mxu1 }
 0x279   : > { %v1118_v40 = vadd.f32 %v1117_v38, %v3273_v54  ;;  %v1517_v41 = vadd.f32 %v1516_v39, %v3239_v8 }
 0x27a   : > { %1799 = vst [vmem:[%s3279_s17 + $0x2a0] sm:$0xff] %v1116_v36  ;;  %1792 = vst [vmem:[%s3279_s17 + $0x268] sm:$0xff] %v1522_v37 }
 0x27b   : > { %1800 = vst [vmem:[%s3279_s17 + $0x2a8] sm:$0xff] %v1118_v40  ;;  %1789 = vst [vmem:[%s3279_s17 + $0x250] sm:$0xff] %v1517_v41  ;;  %v1121_v42 = vpop.f32.mrb[74].mxu0  ;;  %v2280_v44 = vpop.f32.mrb[74].mxu1 }
 0x27c   : > { %v1122_v46 = vadd.f32 %v1121_v42, %v3271_v52  ;;  %v1532_v47 = vadd.f32 %v2280_v44, %v3239_v8  ;;  %v1123_v48 = vpop.f32.mrb[75].mxu0  ;;  %v1526_v49 = vpop.f32.mrb[75].mxu1 }
 0x27d   : > { %v1124_v50 = vadd.f32 %v1123_v48, %v3273_v54  ;;  %v1527_v53 = vadd.f32 %v1526_v49, %v3239_v8 }
 0x27e   : > { %1802 = vst [vmem:[%s3279_s17 + $0x2b8] sm:$0xff] %v1122_v46  ;;  %1798 = vst [vmem:[%s3279_s17 + $0x298] sm:$0xff] %v1532_v47 }
 0x27f   : > { %1803 = vst [vmem:[%s3279_s17 + $0x2c0] sm:$0xff] %v1124_v50  ;;  %1795 = vst [vmem:[%s3279_s17 + $0x280] sm:$0xff] %v1527_v53  ;;  %v1127_v25 = vpop.f32.mrb[76].mxu0  ;;  %v2283_v43 = vpop.f32.mrb[76].mxu1 }
 0x280   : > { %v1128_v45 = vadd.f32 %v1127_v25, %v3271_v52  ;;  %v1542_v51 = vadd.f32 %v2283_v43, %v3239_v8  ;;  %v1129_v55 = vpop.f32.mrb[77].mxu0  ;;  %v1536_v56 = vpop.f32.mrb[77].mxu1 }
 0x281   : > { %v1130_v57 = vadd.f32 %v1129_v55, %v3273_v54  ;;  %v1537_v58 = vadd.f32 %v1536_v56, %v3239_v8 }
 0x282   : > { %1805 = vst [vmem:[%s3279_s17 + $0x2d0] sm:$0xff] %v1128_v45  ;;  %1804 = vst [vmem:[%s3279_s17 + $0x2c8] sm:$0xff] %v1542_v51 }
 0x283   : > { %1806 = vst [vmem:[%s3279_s17 + $0x2d8] sm:$0xff] %v1130_v57  ;;  %1801 = vst [vmem:[%s3279_s17 + $0x2b0] sm:$0xff] %v1537_v58  ;;  %v1133_v59 = vpop.f32.mrb[78].mxu0  ;;  %v2286_v34 = vpop.f32.mrb[78].mxu1 }
 0x284   : > { %v1134_v60 = vadd.f32 %v1133_v59, %v3271_v52  ;;  %v1552_v61 = vadd.f32 %v2286_v34, %v3239_v8  ;;  %v1135_v62 = vpop.f32.mrb[79].mxu0  ;;  %v1546_v63 = vpop.f32.mrb[79].mxu1 }
 0x285   : > { %v1136_v0 = vadd.f32 %v1135_v62, %v3273_v54  ;;  %v1547_v1 = vadd.f32 %v1546_v63, %v3239_v8 }
 0x286   : > { %1808 = vst [vmem:[%s3279_s17 + $0x2e8] sm:$0xff] %v1134_v60  ;;  %1810 = vst [vmem:[%s3279_s17 + $0x2f8] sm:$0xff] %v1552_v61 }
 0x287   : > { %1809 = vst [vmem:[%s3279_s17 + $0x2f0] sm:$0xff] %v1136_v0  ;;  %1807 = vst [vmem:[%s3279_s17 + $0x2e0] sm:$0xff] %v1547_v1  ;;  %v1139_v2 = vpop.f32.mrb[80].mxu0  ;;  %v2289_v3 = vpop.f32.mrb[80].mxu1 }
 0x288   : > { %v1140_v4 = vadd.f32 %v1139_v2, %v3271_v52  ;;  %v1562_v5 = vadd.f32 %v2289_v3, %v3239_v8  ;;  %v1141_v6 = vpop.f32.mrb[81].mxu0  ;;  %v1556_v7 = vpop.f32.mrb[81].mxu1 }
 0x289   : > { %v1142_v9 = vadd.f32 %v1141_v6, %v3273_v54  ;;  %v1557_v10 = vadd.f32 %v1556_v7, %v3239_v8 }
 0x28a   : > { %1811 = vst [vmem:[%s3279_s17 + $0x300] sm:$0xff] %v1140_v4  ;;  %1816 = vst [vmem:[%s3279_s17 + $0x328] sm:$0xff] %v1562_v5 }
 0x28b   : > { %1812 = vst [vmem:[%s3279_s17 + $0x308] sm:$0xff] %v1142_v9  ;;  %1813 = vst [vmem:[%s3279_s17 + $0x310] sm:$0xff] %v1557_v10  ;;  %v1145_v11 = vpop.f32.mrb[82].mxu0  ;;  %v2292_v12 = vpop.f32.mrb[82].mxu1 }
 0x28c   : > { %v1146_v13 = vadd.f32 %v1145_v11, %v3271_v52  ;;  %v1572_v14 = vadd.f32 %v2292_v12, %v3239_v8  ;;  %v1147_v15 = vpop.f32.mrb[83].mxu0  ;;  %v1566_v16 = vpop.f32.mrb[83].mxu1 }
 0x28d   : > { %v1148_v17 = vadd.f32 %v1147_v15, %v3273_v54  ;;  %v1567_v18 = vadd.f32 %v1566_v16, %v3239_v8 }
 0x28e   : > { %1814 = vst [vmem:[%s3279_s17 + $0x318] sm:$0xff] %v1146_v13  ;;  %1822 = vst [vmem:[%s3279_s17 + $0x358] sm:$0xff] %v1572_v14 }
 0x28f   : > { %1815 = vst [vmem:[%s3279_s17 + $0x320] sm:$0xff] %v1148_v17  ;;  %1819 = vst [vmem:[%s3279_s17 + $0x340] sm:$0xff] %v1567_v18  ;;  %v1151_v19 = vpop.f32.mrb[84].mxu0  ;;  %v2295_v20 = vpop.f32.mrb[84].mxu1 }
 0x290   : > { %v1152_v21 = vadd.f32 %v1151_v19, %v3271_v52  ;;  %v1582_v22 = vadd.f32 %v2295_v20, %v3239_v8  ;;  %v1153_v23 = vpop.f32.mrb[85].mxu0  ;;  %v1576_v24 = vpop.f32.mrb[85].mxu1 }
 0x291   : > { %v1154_v26 = vadd.f32 %v1153_v23, %v3273_v54  ;;  %v1577_v27 = vadd.f32 %v1576_v24, %v3239_v8 }
 0x292   : > { %1817 = vst [vmem:[%s3279_s17 + $0x330] sm:$0xff] %v1152_v21  ;;  %1828 = vst [vmem:[%s3279_s17 + $0x388] sm:$0xff] %v1582_v22 }
 0x293   : > { %1818 = vst [vmem:[%s3279_s17 + $0x338] sm:$0xff] %v1154_v26  ;;  %1825 = vst [vmem:[%s3279_s17 + $0x370] sm:$0xff] %v1577_v27  ;;  %v1157_v28 = vpop.f32.mrb[86].mxu0  ;;  %v2298_v29 = vpop.f32.mrb[86].mxu1 }
 0x294   : > { %v1158_v30 = vadd.f32 %v1157_v28, %v3271_v52  ;;  %v1592_v31 = vadd.f32 %v2298_v29, %v3239_v8  ;;  %v1159_v32 = vpop.f32.mrb[87].mxu0  ;;  %v1586_v33 = vpop.f32.mrb[87].mxu1 }
 0x295   : > { %v1160_v35 = vadd.f32 %v1159_v32, %v3273_v54  ;;  %v1587_v36 = vadd.f32 %v1586_v33, %v3239_v8 }
 0x296   : > { %1820 = vst [vmem:[%s3279_s17 + $0x348] sm:$0xff] %v1158_v30  ;;  %1834 = vst [vmem:[%s3279_s17 + $0x3b8] sm:$0xff] %v1592_v31 }
 0x297   : > { %1821 = vst [vmem:[%s3279_s17 + $0x350] sm:$0xff] %v1160_v35  ;;  %1831 = vst [vmem:[%s3279_s17 + $0x3a0] sm:$0xff] %v1587_v36  ;;  %v1163_v37 = vpop.f32.mrb[88].mxu0  ;;  %v2301_v38 = vpop.f32.mrb[88].mxu1 }
 0x298   : > { %v1164_v39 = vadd.f32 %v1163_v37, %v3271_v52  ;;  %v1602_v40 = vadd.f32 %v2301_v38, %v3239_v8  ;;  %v1165_v41 = vpop.f32.mrb[89].mxu0  ;;  %v1596_v42 = vpop.f32.mrb[89].mxu1 }
 0x299   : > { %v1166_v44 = vadd.f32 %v1165_v41, %v3273_v54  ;;  %v1597_v46 = vadd.f32 %v1596_v42, %v3239_v8 }
 0x29a   : > { %1823 = vst [vmem:[%s3279_s17 + $0x360] sm:$0xff] %v1164_v39  ;;  %1840 = vst [vmem:[%s3279_s17 + $0x3e8] sm:$0xff] %v1602_v40 }
 0x29b   : > { %1824 = vst [vmem:[%s3279_s17 + $0x368] sm:$0xff] %v1166_v44  ;;  %1837 = vst [vmem:[%s3279_s17 + $0x3d0] sm:$0xff] %v1597_v46  ;;  %v1169_v47 = vpop.f32.mrb[90].mxu0  ;;  %v2304_v48 = vpop.f32.mrb[90].mxu1 }
 0x29c   : > { %v1170_v49 = vadd.f32 %v1169_v47, %v3271_v52  ;;  %v1612_v50 = vadd.f32 %v2304_v48, %v3239_v8  ;;  %v1171_v53 = vpop.f32.mrb[91].mxu0  ;;  %v1606_v25 = vpop.f32.mrb[91].mxu1 }
 0x29d   : > { %v1172_v43 = vadd.f32 %v1171_v53, %v3273_v54  ;;  %v1607_v45 = vadd.f32 %v1606_v25, %v3239_v8 }
 0x29e   : > { %1826 = vst [vmem:[%s3279_s17 + $0x378] sm:$0xff] %v1170_v49  ;;  %1846 = vst [vmem:[%s3279_s17 + $0x418] sm:$0xff] %v1612_v50 }
 0x29f   : > { %1827 = vst [vmem:[%s3279_s17 + $0x380] sm:$0xff] %v1172_v43  ;;  %1843 = vst [vmem:[%s3279_s17 + $0x400] sm:$0xff] %v1607_v45  ;;  %v1175_v51 = vpop.f32.mrb[92].mxu0  ;;  %v2307_v55 = vpop.f32.mrb[92].mxu1 }
 0x2a0   : > { %v1176_v56 = vadd.f32 %v1175_v51, %v3271_v52  ;;  %v1622_v57 = vadd.f32 %v2307_v55, %v3239_v8  ;;  %v1177_v58 = vpop.f32.mrb[93].mxu0  ;;  %v1616_v59 = vpop.f32.mrb[93].mxu1 }
 0x2a1   : > { %v1178_v34 = vadd.f32 %v1177_v58, %v3273_v54  ;;  %v1617_v60 = vadd.f32 %v1616_v59, %v3239_v8 }
 0x2a2   : > { %1829 = vst [vmem:[%s3279_s17 + $0x390] sm:$0xff] %v1176_v56  ;;  %1852 = vst [vmem:[%s3279_s17 + $0x448] sm:$0xff] %v1622_v57 }
 0x2a3   : > { %1830 = vst [vmem:[%s3279_s17 + $0x398] sm:$0xff] %v1178_v34  ;;  %1849 = vst [vmem:[%s3279_s17 + $0x430] sm:$0xff] %v1617_v60  ;;  %v1181_v61 = vpop.f32.mrb[94].mxu0  ;;  %v2310_v62 = vpop.f32.mrb[94].mxu1 }
 0x2a4   : > { %v1182_v63 = vadd.f32 %v1181_v61, %v3271_v52  ;;  %v1632_v0 = vadd.f32 %v2310_v62, %v3239_v8  ;;  %v1183_v1 = vpop.f32.mrb[95].mxu0  ;;  %v1626_v2 = vpop.f32.mrb[95].mxu1 }
 0x2a5   : > { %v1184_v3 = vadd.f32 %v1183_v1, %v3273_v54  ;;  %v1627_v4 = vadd.f32 %v1626_v2, %v3239_v8 }
 0x2a6   : > { %1832 = vst [vmem:[%s3279_s17 + $0x3a8] sm:$0xff] %v1182_v63  ;;  %1858 = vst [vmem:[%s3279_s17 + $0x478] sm:$0xff] %v1632_v0 }
 0x2a7   : > { %1833 = vst [vmem:[%s3279_s17 + $0x3b0] sm:$0xff] %v1184_v3  ;;  %1855 = vst [vmem:[%s3279_s17 + $0x460] sm:$0xff] %v1627_v4  ;;  %v1187_v5 = vpop.f32.mrb[96].mxu0  ;;  %v2313_v6 = vpop.f32.mrb[96].mxu1 }
 0x2a8   : > { %v1188_v7 = vadd.f32 %v1187_v5, %v3271_v52  ;;  %v1642_v9 = vadd.f32 %v2313_v6, %v3239_v8  ;;  %v1189_v10 = vpop.f32.mrb[97].mxu0  ;;  %v1636_v11 = vpop.f32.mrb[97].mxu1 }
 0x2a9   : > { %v1190_v12 = vadd.f32 %v1189_v10, %v3273_v54  ;;  %v1637_v13 = vadd.f32 %v1636_v11, %v3239_v8 }
 0x2aa   : > { %1835 = vst [vmem:[%s3279_s17 + $0x3c0] sm:$0xff] %v1188_v7  ;;  %1864 = vst [vmem:[%s3279_s17 + $0x4a8] sm:$0xff] %v1642_v9 }
 0x2ab   : > { %1836 = vst [vmem:[%s3279_s17 + $0x3c8] sm:$0xff] %v1190_v12  ;;  %1861 = vst [vmem:[%s3279_s17 + $0x490] sm:$0xff] %v1637_v13  ;;  %v1193_v14 = vpop.f32.mrb[98].mxu0  ;;  %v2316_v15 = vpop.f32.mrb[98].mxu1 }
 0x2ac   : > { %v1194_v16 = vadd.f32 %v1193_v14, %v3271_v52  ;;  %v1652_v17 = vadd.f32 %v2316_v15, %v3239_v8  ;;  %v1195_v18 = vpop.f32.mrb[99].mxu0  ;;  %v1646_v19 = vpop.f32.mrb[99].mxu1 }
 0x2ad   : > { %v1196_v20 = vadd.f32 %v1195_v18, %v3273_v54  ;;  %v1647_v21 = vadd.f32 %v1646_v19, %v3239_v8 }
 0x2ae   : > { %1838 = vst [vmem:[%s3279_s17 + $0x3d8] sm:$0xff] %v1194_v16  ;;  %1870 = vst [vmem:[%s3279_s17 + $0x4d8] sm:$0xff] %v1652_v17 }
 0x2af   : > { %1839 = vst [vmem:[%s3279_s17 + $0x3e0] sm:$0xff] %v1196_v20  ;;  %1867 = vst [vmem:[%s3279_s17 + $0x4c0] sm:$0xff] %v1647_v21  ;;  %v1199_v22 = vpop.f32.mrb[100].mxu0  ;;  %v2319_v23 = vpop.f32.mrb[100].mxu1 }
 0x2b0   : > { %v1200_v24 = vadd.f32 %v1199_v22, %v3271_v52  ;;  %v1662_v26 = vadd.f32 %v2319_v23, %v3239_v8  ;;  %v1201_v27 = vpop.f32.mrb[101].mxu0  ;;  %v1656_v28 = vpop.f32.mrb[101].mxu1 }
 0x2b1   : > { %v1202_v29 = vadd.f32 %v1201_v27, %v3273_v54  ;;  %v1657_v30 = vadd.f32 %v1656_v28, %v3239_v8 }
 0x2b2   : > { %1841 = vst [vmem:[%s3279_s17 + $0x3f0] sm:$0xff] %v1200_v24  ;;  %1876 = vst [vmem:[%s3279_s17 + $0x508] sm:$0xff] %v1662_v26 }
 0x2b3   : > { %1842 = vst [vmem:[%s3279_s17 + $0x3f8] sm:$0xff] %v1202_v29  ;;  %1873 = vst [vmem:[%s3279_s17 + $0x4f0] sm:$0xff] %v1657_v30  ;;  %v1205_v31 = vpop.f32.mrb[102].mxu0  ;;  %v2322_v32 = vpop.f32.mrb[102].mxu1 }
 0x2b4   : > { %v1206_v33 = vadd.f32 %v1205_v31, %v3271_v52  ;;  %v1672_v35 = vadd.f32 %v2322_v32, %v3239_v8  ;;  %v1207_v36 = vpop.f32.mrb[103].mxu0  ;;  %v1666_v37 = vpop.f32.mrb[103].mxu1 }
 0x2b5   : > { %v1208_v38 = vadd.f32 %v1207_v36, %v3273_v54  ;;  %v1667_v39 = vadd.f32 %v1666_v37, %v3239_v8 }
 0x2b6   : > { %1844 = vst [vmem:[%s3279_s17 + $0x408] sm:$0xff] %v1206_v33  ;;  %1882 = vst [vmem:[%s3279_s17 + $0x538] sm:$0xff] %v1672_v35 }
 0x2b7   : > { %1845 = vst [vmem:[%s3279_s17 + $0x410] sm:$0xff] %v1208_v38  ;;  %1879 = vst [vmem:[%s3279_s17 + $0x520] sm:$0xff] %v1667_v39  ;;  %v1211_v40 = vpop.f32.mrb[104].mxu0  ;;  %v2325_v41 = vpop.f32.mrb[104].mxu1 }
 0x2b8   : > { %v1212_v42 = vadd.f32 %v1211_v40, %v3271_v52  ;;  %v1682_v44 = vadd.f32 %v2325_v41, %v3239_v8  ;;  %v1213_v46 = vpop.f32.mrb[105].mxu0  ;;  %v1676_v47 = vpop.f32.mrb[105].mxu1 }
 0x2b9   : > { %v1214_v48 = vadd.f32 %v1213_v46, %v3273_v54  ;;  %v1677_v49 = vadd.f32 %v1676_v47, %v3239_v8 }
 0x2ba   : > { %1847 = vst [vmem:[%s3279_s17 + $0x420] sm:$0xff] %v1212_v42  ;;  %1888 = vst [vmem:[%s3279_s17 + $0x568] sm:$0xff] %v1682_v44 }
 0x2bb   : > { %1848 = vst [vmem:[%s3279_s17 + $0x428] sm:$0xff] %v1214_v48  ;;  %1885 = vst [vmem:[%s3279_s17 + $0x550] sm:$0xff] %v1677_v49  ;;  %v1217_v50 = vpop.f32.mrb[106].mxu0  ;;  %v2328_v53 = vpop.f32.mrb[106].mxu1 }
 0x2bc   : > { %v1218_v25 = vadd.f32 %v1217_v50, %v3271_v52  ;;  %v1692_v43 = vadd.f32 %v2328_v53, %v3239_v8  ;;  %v1219_v45 = vpop.f32.mrb[107].mxu0  ;;  %v1686_v51 = vpop.f32.mrb[107].mxu1 }
 0x2bd   : > { %v1220_v55 = vadd.f32 %v1219_v45, %v3273_v54  ;;  %v1687_v56 = vadd.f32 %v1686_v51, %v3239_v8 }
 0x2be   : > { %1850 = vst [vmem:[%s3279_s17 + $0x438] sm:$0xff] %v1218_v25  ;;  %1894 = vst [vmem:[%s3279_s17 + $0x598] sm:$0xff] %v1692_v43 }
 0x2bf   : > { %1851 = vst [vmem:[%s3279_s17 + $0x440] sm:$0xff] %v1220_v55  ;;  %1891 = vst [vmem:[%s3279_s17 + $0x580] sm:$0xff] %v1687_v56  ;;  %v1223_v57 = vpop.f32.mrb[108].mxu0  ;;  %v2331_v58 = vpop.f32.mrb[108].mxu1 }
 0x2c0   : > { %v1224_v59 = vadd.f32 %v1223_v57, %v3271_v52  ;;  %v1702_v34 = vadd.f32 %v2331_v58, %v3239_v8  ;;  %v1225_v60 = vpop.f32.mrb[109].mxu0  ;;  %v1696_v61 = vpop.f32.mrb[109].mxu1 }
 0x2c1   : > { %v1226_v62 = vadd.f32 %v1225_v60, %v3273_v54  ;;  %v1697_v63 = vadd.f32 %v1696_v61, %v3239_v8 }
 0x2c2   : > { %1853 = vst [vmem:[%s3279_s17 + $0x450] sm:$0xff] %v1224_v59  ;;  %1900 = vst [vmem:[%s3279_s17 + $0x5c8] sm:$0xff] %v1702_v34 }
 0x2c3   : > { %1854 = vst [vmem:[%s3279_s17 + $0x458] sm:$0xff] %v1226_v62  ;;  %1897 = vst [vmem:[%s3279_s17 + $0x5b0] sm:$0xff] %v1697_v63  ;;  %v1229_v0 = vpop.f32.mrb[110].mxu0  ;;  %v2334_v1 = vpop.f32.mrb[110].mxu1 }
 0x2c4   : > { %v1230_v2 = vadd.f32 %v1229_v0, %v3271_v52  ;;  %v1712_v3 = vadd.f32 %v2334_v1, %v3239_v8  ;;  %v1231_v4 = vpop.f32.mrb[111].mxu0  ;;  %v1706_v5 = vpop.f32.mrb[111].mxu1 }
 0x2c5   : > { %v1232_v6 = vadd.f32 %v1231_v4, %v3273_v54  ;;  %v1707_v7 = vadd.f32 %v1706_v5, %v3239_v8 }
 0x2c6   : > { %1856 = vst [vmem:[%s3279_s17 + $0x468] sm:$0xff] %v1230_v2  ;;  %1906 = vst [vmem:[%s3279_s17 + $0x5f8] sm:$0xff] %v1712_v3 }
 0x2c7   : > { %1857 = vst [vmem:[%s3279_s17 + $0x470] sm:$0xff] %v1232_v6  ;;  %1903 = vst [vmem:[%s3279_s17 + $0x5e0] sm:$0xff] %v1707_v7 }
 0x2c8   : > { %2511 = shalt.err (!%p2508_p2)
}
 0x2c9   : > { %s2512_s12 = scalar_lea.hbm %s3660_s23, 24576  ;;  %s2516_s17 = scalar_lea.hbm %s3719_s7, 49152 }
 0x2ca   : > { %p2513_p4 = scmp.ne.s32.totalorder %s3660_s23, %s2512_s12  ;;  %p2517_p9 = scmp.lt.u32.totalorder %s3660_s23, %s3719_s7 }
 0x2cb   : > { %p2518_p1 = scmp.lt.u32.totalorder %s2516_s17, %s2512_s12  ;;  %p2520_p6 = scmp.lt.u32.totalorder %s2512_s12, %s3660_s23 }
 0x2cc   : > { %p2514_p5 = pnand %p2513_p4, %p3726_p11 }
 0x2cd   : > { %p2519_p3 = por %p2518_p1, %p2517_p9 }
 0x2ce   : > { %p2515_p7 = pneg %p2514_p5 }
 0x2cf   : > { %p2521_p12 = por %p2520_p6, %p2519_p3 }
 0x2d1   : > { %p2522_p13 = pnand %p2521_p12, %p2515_p7 }
 0x2d3   : > { %2525 = shalt.err (!%p2522_p13)
}
 0x2d4   : > { %s2571_s22 = smov 384   ;;  %s2572_s19 = smov 24  }
 0x2d5   : > { %2419 = dma.vmem_to_hbm [thread:$0]  (%p3726_p11), %s3662_s20, 24576, %s3660_s23, %s1908_s29, %s2571_s22, %s2571_s22, %s2572_s19  }
 0x2d6 PF: > { %s1937_s21 = sand.u32 1, %s2552_s24   ;;  %p3727_p8 = scmp.ne.s32.totalorder %s3724_s14, 0 }
 0x2d7   : > { %p3728_p10 = scmp.ge.s32.totalorder %s2564_s27, 2  ;;  %s1938_s9 = scalar_lea.sflag [#allocation4], %s1937_s21 }
 0x2d9   : > { %p2426_p0 = pnand %p3728_p10, %p3727_p8 }
 0x2db   : > { %2547 = dma.done.wait (!%p2426_p0), %s1938_s9, 24576  }
 0x2dc   : > { %2549 = vsyncadd (!%p2426_p0), %s1938_s9, 4294942720  ;;  %p20_p2 = scmp.ge.s32.totalorder %s2638_s30, 4   ;;  %s3729_s24 = smov %s2556_s25 }
 0x2dd   : > { %s3730_s25 = smov %s2560_s26  ;;  %s3731_s26 = smov %s2650_s10 }
 0x2de   : > { %s3732_s27 = smov %s2638_s30  ;;  %22 = sbr.rel (!%p20_p2) target bundleno = 5 (0x5), region = 93 }
 0x2e5   :  { %1943 = vsyncpa [#allocation3], 1 }
 0x2e6   :  { %1945 = vsyncpa [#allocation3 + $0x1], 1 }
 0x2e7   :  { %1946 = vsyncpa [#allocation4], 1 }
 0x2e8   :  { %1948 = vsyncpa [#allocation4 + $0x1], 1 }

</bundles_post_ra>
